<compile_context>
chip_gen: v7x
topology: tpu7x:2x2x1
jax: 0.10.0
libtpu: 0.0.40
codegen_flags: <defaults>
</compile_context>

<pallas_src>
import math

import jax
import jax.numpy as jnp
import numpy as np
from jax.experimental import pallas as pl
from jax.experimental.pallas import tpu as pltpu


def _make_kernel(C, TL, H, dilation, res_dtype, skip_dtype):
    W_ext = TL + H
    inv_sqrt2 = np.float32(1.0 / math.sqrt(2.0))
    f32 = jnp.float32
    bf16 = jnp.bfloat16

    def kernel(x_ref, d_ref, halo_ref, cond_ref,
               w0_ref, w1_ref, w2_ref, wc_ref, bf_ref, wo_ref, bo_ref,
               res_ref, skip_ref):
        x = x_ref[...].astype(f32)                       # [C, TL] native -> f32
        y = x + d_ref[...]                               # y = x + diffusion bias
        y_bf = y.astype(bf16)

        # Extended window [ y | right_halo, 0...0, left_halo ].  The halo slab
        # is y-valued (the wrapper baked in +d and sequence-edge zeros), so one
        # roll gives each shifted copy with correct cross-tile boundary values.
        y_ext = jnp.concatenate([y, halo_ref[...].astype(f32)], axis=1)   # [C, TL+H]
        y_prev = pltpu.roll(y_ext, dilation, axis=1)[:, :TL].astype(bf16)          # y[t-dil]
        y_next = pltpu.roll(y_ext, W_ext - dilation, axis=1)[:, :TL].astype(bf16)  # y[t+dil]

        # Dilated conv (3 taps) + 1x1 conditioner projection as 4 accumulating
        # MXU matmuls into one f32 accumulator (no materialized K-concat).
        conv = jnp.dot(w1_ref[...], y_bf, preferred_element_type=f32)
        conv += jnp.dot(w0_ref[...], y_prev, preferred_element_type=f32)
        conv += jnp.dot(w2_ref[...], y_next, preferred_element_type=f32)
        conv += jnp.dot(wc_ref[...], cond_ref[...], preferred_element_type=f32)
        conv += bf_ref[...]                               # [2C, TL]

        z = jax.nn.sigmoid(conv[:C, :]) * jnp.tanh(conv[C:, :])          # [C, TL] f32

        out = jnp.dot(wo_ref[...], z.astype(bf16),
                      preferred_element_type=f32) + bo_ref[...]          # [2C, TL]

        res_ref[...] = ((x + out[:C, :]) * inv_sqrt2).astype(res_dtype)
        skip_ref[...] = out[C:, :].astype(skip_dtype)

    return kernel


def _vmem_per_col_bytes(C, n_mels, x_bytes, res_bytes, skip_bytes):
    """Approximate VMEM bytes per time column (double-buffered blocks + temps)."""
    io = 2 * (C * x_bytes + n_mels * 2 + C * res_bytes + C * skip_bytes)
    tmp = 8 * C          # bf16 slabs: y_bf, y_prev, y_next, z(bf16)
    tmp += 20 * C        # f32 shift pipeline: y, y_ext, rolled copies
    tmp += 16 * C        # conv / out f32 accumulators (2C rows)
    tmp += 4 * C         # z in f32
    return io + tmp


def _vmem_fixed_bytes(C, n_mels, H):
    halo = 2 * C * H * 2                                           # bf16 halo slab
    weights = 2 * (4 * (2 * C) * C * 2 + (2 * C) * n_mels * 2 + 2 * (2 * C) * 4)
    d = 2 * C * 4
    return halo + weights + d + (1 << 20)                          # + 1 MiB slack


def _choose_time_tile(L, dilation, B, per_col, fixed, *, target=4096,
                      vmem_budget=40 << 20, min_parallel_steps=4):
    """Largest multiple-of-128 divisor of L that is <= target, fits the VMEM
    budget (v7x-safe) and, if possible, keeps >= min_parallel_steps grid steps
    so megacore sharding has work for both TensorCores."""
    cands = [c for c in range(128, L + 1, 128) if L % c == 0 and c >= dilation]
    if not cands:
        raise ValueError(
            f"no multiple-of-128 tile divides L={L} with tile >= dilation={dilation}")
    fit = [c for c in cands if c <= target and c * per_col + fixed <= vmem_budget]
    if not fit:
        fit = [min(cands)]
    good = [c for c in fit if B * (L // c) >= min_parallel_steps]
    return max(good) if good else max(fit)


def residual_block_forward(x, diffusion_step, conditioner, params, dilation, *,
                           tl=None, skip_dtype=jnp.bfloat16):
    """diffwave ResidualBlock forward (conditional branch).

    Returns ((x + residual)/sqrt(2), skip).  `skip` is emitted in `skip_dtype`
    (bf16 by default; pass jnp.float32 to match the module's dtype exactly).
    """
    # TODO(synk): the uncond (conditioner=None) branch of the module is not kernelized.
    B, C, L = x.shape
    n_mels = conditioner.shape[1]
    assert 0 < dilation < L

    f32, bf16 = jnp.float32, jnp.bfloat16
    x_dtype = x.dtype
    res_dtype = x_dtype
    orig_L = L

    # Hoisted diffusion projection: d = Linear(512, C)(diffusion_step) -> [B, C].
    d = (jnp.dot(diffusion_step.astype(f32), params["w_diff"].T.astype(f32),
                 precision=jax.lax.Precision.HIGHEST)
         + params["b_diff"].astype(f32))

    # Pad L to a multiple of 128.  Padded x columns hold -d so that y = x + d
    # is exactly the conv's zero padding there; padded outputs are discarded.
    if L % 128 != 0:
        L_pad = ((L + 127) // 128) * 128
        pad_x = jnp.broadcast_to((-d).astype(x_dtype)[:, :, None], (B, C, L_pad - L))
        x = jnp.concatenate([x, pad_x], axis=-1)
        conditioner = jnp.pad(conditioner, ((0, 0), (0, 0), (0, L_pad - L)))
        L = L_pad

    H = max(128, ((2 * dilation + 127) // 128) * 128)   # lane-aligned halo slab width
    per_col = _vmem_per_col_bytes(C, n_mels, x_dtype.itemsize,
                                  jnp.dtype(res_dtype).itemsize,
                                  jnp.dtype(skip_dtype).itemsize)
    fixed = _vmem_fixed_bytes(C, n_mels, H)
    TL = _choose_time_tile(L, dilation, B, per_col, fixed) if tl is None else tl
    assert L % TL == 0 and TL % 128 == 0
    n_tiles = L // TL
    assert dilation <= TL, "halo only covers the immediately adjacent tile"
    assert 2 * dilation <= H

    vmem_limit = int(min(56 << 20, max(32 << 20, int((TL * per_col + fixed) * 1.4))))

    # Per-tile halo slabs built from neighbor-tile edge columns only (no
    # full-length padded copies of x); y-valued, zero at sequence edges, bf16.
    # Layout along last axis: [ right(dil) | zeros | left(dil) ].
    x4 = x.reshape(B, C, n_tiles, TL)
    d4 = d[:, :, None, None]
    zeros_edge = jnp.zeros((B, C, 1, dilation), f32)
    left_src = x4[:, :, :-1, TL - dilation:].astype(f32) + d4   # tile j-1's last dil cols
    right_src = x4[:, :, 1:, :dilation].astype(f32) + d4        # tile j+1's first dil cols
    left_y = jnp.concatenate([zeros_edge, left_src], axis=2)     # [B, C, n_tiles, dil]
    right_y = jnp.concatenate([right_src, zeros_edge], axis=2)   # [B, C, n_tiles, dil]
    pieces = [jnp.transpose(right_y, (0, 2, 1, 3))]
    if H > 2 * dilation:
        pieces.append(jnp.zeros((B, n_tiles, C, H - 2 * dilation), f32))
    pieces.append(jnp.transpose(left_y, (0, 2, 1, 3)))
    halo = jnp.concatenate(pieces, axis=-1).astype(bf16)         # [B, n_tiles, C, H]

    # Weights: bf16 MXU operands, f32 biases (conv bias + conditioner bias folded).
    w_dil = params["w_dil"]                                      # [2C, C, 3]
    w0 = w_dil[:, :, 0].astype(bf16)
    w1 = w_dil[:, :, 1].astype(bf16)
    w2 = w_dil[:, :, 2].astype(bf16)
    wc = params["w_cond"].astype(bf16)                           # [2C, n_mels]
    b_fused = (params["b_dil"].astype(f32) + params["b_cond"].astype(f32))[:, None]
    w_out = params["w_out"].astype(bf16)                         # [2C, C]
    b_out = params["b_out"].astype(f32)[:, None]
    cond_bf16 = conditioner.astype(bf16)
    d3 = d[:, :, None]                                           # [B, C, 1]

    kernel = _make_kernel(C, TL, H, dilation, res_dtype, skip_dtype)
    const = lambda b, j: (0, 0)

    grid_spec = pltpu.PrefetchScalarGridSpec(
        num_scalar_prefetch=0,
        grid=(B, n_tiles),
        in_specs=[
            pl.BlockSpec((None, C, TL), lambda b, j: (b, 0, j)),          # x (native dtype)
            pl.BlockSpec((None, C, 1), lambda b, j: (b, 0, 0)),           # d (f32)
            pl.BlockSpec((None, None, C, H), lambda b, j: (b, j, 0, 0)),  # halo (bf16)
            pl.BlockSpec((None, n_mels, TL), lambda b, j: (b, 0, j)),     # conditioner (bf16)
            pl.BlockSpec((2 * C, C), const),                              # w_dil tap 0
            pl.BlockSpec((2 * C, C), const),                              # w_dil tap 1
            pl.BlockSpec((2 * C, C), const),                              # w_dil tap 2
            pl.BlockSpec((2 * C, n_mels), const),                         # w_cond
            pl.BlockSpec((2 * C, 1), const),                              # b_dil + b_cond
            pl.BlockSpec((2 * C, C), const),                              # w_out
            pl.BlockSpec((2 * C, 1), const),                              # b_out
        ],
        out_specs=[
            pl.BlockSpec((None, C, TL), lambda b, j: (b, 0, j)),          # (x+residual)/sqrt(2)
            pl.BlockSpec((None, C, TL), lambda b, j: (b, 0, j)),          # skip
        ],
    )

    res, skip = pl.pallas_call(
        kernel,
        out_shape=(
            jax.ShapeDtypeStruct((B, C, L), res_dtype),
            jax.ShapeDtypeStruct((B, C, L), skip_dtype),
        ),
        grid_spec=grid_spec,
        compiler_params=pltpu.CompilerParams(
            dimension_semantics=("parallel", "parallel"),
            vmem_limit_bytes=vmem_limit),
    )(x, d3, halo, cond_bf16, w0, w1, w2, wc, b_fused, w_out, b_out)

    if L != orig_L:
        res = res[:, :, :orig_L]
        skip = skip[:, :, :orig_L]
    return res, skip


def residual_block_ref(x, diffusion_step, conditioner, params, dilation):
    """Pure-JAX reference matching the PyTorch forward."""
    hp = jax.lax.Precision.HIGHEST
    d = jnp.dot(diffusion_step, params["w_diff"].T, precision=hp) + params["b_diff"]
    y = x + d[:, :, None]
    conv = jax.lax.conv_general_dilated(
        y, params["w_dil"], window_strides=(1,),
        padding=[(dilation, dilation)], rhs_dilation=(dilation,),
        dimension_numbers=("NCH", "OIH", "NCH"), precision=hp)
    conv = conv + params["b_dil"][None, :, None]
    cond = jnp.einsum("oc,bcl->bol", params["w_cond"], conditioner, precision=hp)
    cond = cond + params["b_cond"][None, :, None]
    y2 = conv + cond
    gate, filt = jnp.split(y2, 2, axis=1)
    z = jax.nn.sigmoid(gate) * jnp.tanh(filt)
    out = jnp.einsum("oc,bcl->bol", params["w_out"], z, precision=hp)
    out = out + params["b_out"][None, :, None]
    residual, skip = jnp.split(out, 2, axis=1)
    return (x + residual) / math.sqrt(2.0), skip


if __name__ == "__main__":
    C, n_mels, D = 64, 16, 512   # residual_channels, mel bins, diffusion embedding dim

    def make_params(key):
        ks = jax.random.split(key, 8)
        return dict(
            w_dil=jax.random.normal(ks[0], (2 * C, C, 3), jnp.float32) * math.sqrt(2.0 / (C * 3)),
            b_dil=jax.random.normal(ks[1], (2 * C,), jnp.float32) * 0.05,
            w_diff=jax.random.normal(ks[2], (C, D), jnp.float32) * (1.0 / math.sqrt(D)),
            b_diff=jax.random.normal(ks[3], (C,), jnp.float32) * 0.05,
            w_cond=jax.random.normal(ks[4], (2 * C, n_mels), jnp.float32) * math.sqrt(2.0 / n_mels),
            b_cond=jax.random.normal(ks[5], (2 * C,), jnp.float32) * 0.05,
            w_out=jax.random.normal(ks[6], (2 * C, C), jnp.float32) * math.sqrt(2.0 / C),
            b_out=jax.random.normal(ks[7], (2 * C,), jnp.float32) * 0.05,
        )

    key = jax.random.PRNGKey(0)
    cases = [
        # (B, L, dilation, tl)
        (2, 512, 2, None),   # aligned L, auto tile (TL=256 -> 2 tiles x 2 batch = 4 steps)
        (2, 400, 8, 128),    # unaligned L (pad-to-128 path) + interior tiles + larger dilation
    ]
    for B, L, dilation, tl in cases:
        kp, kx, kd, kc, key = jax.random.split(key, 5)
        params = make_params(kp)
        x = jax.random.normal(kx, (B, C, L), jnp.float32)
        diffusion_step = jax.random.normal(kd, (B, D), jnp.float32)
        conditioner = jax.random.normal(kc, (B, n_mels, L), jnp.float32)

        res, skip = residual_block_forward(x, diffusion_step, conditioner, params,
                                           dilation, tl=tl)
        jax.block_until_ready((res, skip))

        res_ref, skip_ref = residual_block_ref(x, diffusion_step, conditioner, params, dilation)
        np.testing.assert_allclose(np.asarray(res.astype(jnp.float32)),
                                   np.asarray(res_ref), rtol=5e-2, atol=5e-2)
        np.testing.assert_allclose(np.asarray(skip.astype(jnp.float32)),
                                   np.asarray(skip_ref), rtol=5e-2, atol=5e-2)

    print("KERNEL_OK")
</pallas_src>

<mosaic_0001>
module attributes {stable_mosaic.version = 11 : i64} {
  func.func @kernel(%arg0: i32, %arg1: i32, %arg2: memref<1x64x256xf32, #tpu.memory_space<vmem>>, %arg3: memref<1x64x1xf32, #tpu.memory_space<vmem>>, %arg4: memref<1x1x64x128xbf16, #tpu.memory_space<vmem>>, %arg5: memref<1x16x256xbf16, #tpu.memory_space<vmem>>, %arg6: memref<128x64xbf16, #tpu.memory_space<vmem>>, %arg7: memref<128x64xbf16, #tpu.memory_space<vmem>>, %arg8: memref<128x64xbf16, #tpu.memory_space<vmem>>, %arg9: memref<128x16xbf16, #tpu.memory_space<vmem>>, %arg10: memref<128x1xf32, #tpu.memory_space<vmem>>, %arg11: memref<128x64xbf16, #tpu.memory_space<vmem>>, %arg12: memref<128x1xf32, #tpu.memory_space<vmem>>, %arg13: memref<1x64x256xf32, #tpu.memory_space<vmem>>, %arg14: memref<1x64x256xbf16, #tpu.memory_space<vmem>>) attributes {dimension_semantics = [#tpu.dimension_semantics<parallel>, #tpu.dimension_semantics<parallel>], iteration_bounds = array<i64: 2, 2>, scalar_prefetch = 0 : i64, scratch_operands = 0 : i64, tpu.core_type = #tpu.core_type<tc>, window_params = [{transform_indices = @transform_0, window_bounds = array<i64: 1, 64, 256>}, {transform_indices = @transform_1, window_bounds = array<i64: 1, 64, 1>}, {transform_indices = @transform_2, window_bounds = array<i64: 1, 1, 64, 128>}, {transform_indices = @transform_3, window_bounds = array<i64: 1, 16, 256>}, {pipeline_mode = #tpu.pipeline_mode<synchronous>, transform_indices = @transform_4, window_bounds = array<i64: 128, 64>}, {pipeline_mode = #tpu.pipeline_mode<synchronous>, transform_indices = @transform_5, window_bounds = array<i64: 128, 64>}, {pipeline_mode = #tpu.pipeline_mode<synchronous>, transform_indices = @transform_6, window_bounds = array<i64: 128, 64>}, {pipeline_mode = #tpu.pipeline_mode<synchronous>, transform_indices = @transform_7, window_bounds = array<i64: 128, 16>}, {pipeline_mode = #tpu.pipeline_mode<synchronous>, transform_indices = @transform_8, window_bounds = array<i64: 128, 1>}, {pipeline_mode = #tpu.pipeline_mode<synchronous>, transform_indices = @transform_9, window_bounds = array<i64: 128, 64>}, {pipeline_mode = #tpu.pipeline_mode<synchronous>, transform_indices = @transform_10, window_bounds = array<i64: 128, 1>}, {transform_indices = @transform_11, window_bounds = array<i64: 1, 64, 256>}, {transform_indices = @transform_12, window_bounds = array<i64: 1, 64, 256>}]} {
    %c0 = arith.constant 0 : index
    %c0_0 = arith.constant 0 : index
    %c0_1 = arith.constant 0 : index
    %0 = vector.load %arg2[%c0, %c0_0, %c0_1] : memref<1x64x256xf32, #tpu.memory_space<vmem>>, vector<1x64x256xf32>
    %1 = vector.shape_cast %0 : vector<1x64x256xf32> to vector<64x256xf32>
    %c0_2 = arith.constant 0 : index
    %c0_3 = arith.constant 0 : index
    %c0_4 = arith.constant 0 : index
    %2 = vector.load %arg3[%c0_2, %c0_3, %c0_4] : memref<1x64x1xf32, #tpu.memory_space<vmem>>, vector<1x64x1xf32>
    %3 = vector.shape_cast %2 : vector<1x64x1xf32> to vector<64x1xf32>
    %4 = vector.broadcast %3 : vector<64x1xf32> to vector<64x256xf32>
    %5 = arith.addf %1, %4 : vector<64x256xf32>
    %6 = arith.truncf %5 : vector<64x256xf32> to vector<64x256xbf16>
    %c0_5 = arith.constant 0 : index
    %c0_6 = arith.constant 0 : index
    %c0_7 = arith.constant 0 : index
    %c0_8 = arith.constant 0 : index
    %7 = vector.load %arg4[%c0_5, %c0_6, %c0_7, %c0_8] : memref<1x1x64x128xbf16, #tpu.memory_space<vmem>>, vector<1x1x64x128xbf16>
    %8 = vector.shape_cast %7 : vector<1x1x64x128xbf16> to vector<64x128xbf16>
    %9 = arith.extf %8 : vector<64x128xbf16> to vector<64x128xf32>
    %10 = tpu.concatenate %5, %9 in 1 : vector<64x256xf32>, vector<64x128xf32> -> vector<64x384xf32>
    %c2_i32 = arith.constant 2 : i32
    %11 = tpu.dynamic_rotate %10 by %c2_i32 dim 1 : vector<64x384xf32>, i32 -> vector<64x384xf32>
    %12 = vector.extract_strided_slice %11 {offsets = [0, 0], sizes = [64, 256], strides = [1, 1]} : vector<64x384xf32> to vector<64x256xf32>
    %13 = arith.truncf %12 : vector<64x256xf32> to vector<64x256xbf16>
    %c382_i32 = arith.constant 382 : i32
    %14 = tpu.dynamic_rotate %10 by %c382_i32 dim 1 : vector<64x384xf32>, i32 -> vector<64x384xf32>
    %15 = vector.extract_strided_slice %14 {offsets = [0, 0], sizes = [64, 256], strides = [1, 1]} : vector<64x384xf32> to vector<64x256xf32>
    %16 = arith.truncf %15 : vector<64x256xf32> to vector<64x256xbf16>
    %c0_9 = arith.constant 0 : index
    %c0_10 = arith.constant 0 : index
    %17 = vector.load %arg7[%c0_9, %c0_10] : memref<128x64xbf16, #tpu.memory_space<vmem>>, vector<128x64xbf16>
    %cst = arith.constant dense<0.000000e+00> : vector<128x256xf32>
    %18 = tpu.matmul %17, %6, %cst {dimension_numbers = #tpu.dot_dimension_numbers<[1], [0], [0], [1], [0, 0, 1, 1], [], []>} : vector<128x64xbf16>, vector<64x256xbf16>, vector<128x256xf32> -> vector<128x256xf32>
    %c0_11 = arith.constant 0 : index
    %c0_12 = arith.constant 0 : index
    %19 = vector.load %arg6[%c0_11, %c0_12] : memref<128x64xbf16, #tpu.memory_space<vmem>>, vector<128x64xbf16>
    %cst_13 = arith.constant dense<0.000000e+00> : vector<128x256xf32>
    %20 = tpu.matmul %19, %13, %cst_13 {dimension_numbers = #tpu.dot_dimension_numbers<[1], [0], [0], [1], [0, 0, 1, 1], [], []>} : vector<128x64xbf16>, vector<64x256xbf16>, vector<128x256xf32> -> vector<128x256xf32>
    %21 = arith.addf %18, %20 : vector<128x256xf32>
    %c0_14 = arith.constant 0 : index
    %c0_15 = arith.constant 0 : index
    %22 = vector.load %arg8[%c0_14, %c0_15] : memref<128x64xbf16, #tpu.memory_space<vmem>>, vector<128x64xbf16>
    %cst_16 = arith.constant dense<0.000000e+00> : vector<128x256xf32>
    %23 = tpu.matmul %22, %16, %cst_16 {dimension_numbers = #tpu.dot_dimension_numbers<[1], [0], [0], [1], [0, 0, 1, 1], [], []>} : vector<128x64xbf16>, vector<64x256xbf16>, vector<128x256xf32> -> vector<128x256xf32>
    %24 = arith.addf %21, %23 : vector<128x256xf32>
    %c0_17 = arith.constant 0 : index
    %c0_18 = arith.constant 0 : index
    %25 = vector.load %arg9[%c0_17, %c0_18] : memref<128x16xbf16, #tpu.memory_space<vmem>>, vector<128x16xbf16>
    %c0_19 = arith.constant 0 : index
    %c0_20 = arith.constant 0 : index
    %c0_21 = arith.constant 0 : index
    %26 = vector.load %arg5[%c0_19, %c0_20, %c0_21] : memref<1x16x256xbf16, #tpu.memory_space<vmem>>, vector<1x16x256xbf16>
    %27 = vector.shape_cast %26 : vector<1x16x256xbf16> to vector<16x256xbf16>
    %cst_22 = arith.constant dense<0.000000e+00> : vector<128x256xf32>
    %28 = tpu.matmul %25, %27, %cst_22 {dimension_numbers = #tpu.dot_dimension_numbers<[1], [0], [0], [1], [0, 0, 1, 1], [], []>} : vector<128x16xbf16>, vector<16x256xbf16>, vector<128x256xf32> -> vector<128x256xf32>
    %29 = arith.addf %24, %28 : vector<128x256xf32>
    %c0_23 = arith.constant 0 : index
    %c0_24 = arith.constant 0 : index
    %30 = vector.load %arg10[%c0_23, %c0_24] : memref<128x1xf32, #tpu.memory_space<vmem>>, vector<128x1xf32>
    %31 = vector.broadcast %30 : vector<128x1xf32> to vector<128x256xf32>
    %32 = arith.addf %29, %31 : vector<128x256xf32>
    %33 = vector.extract_strided_slice %32 {offsets = [0, 0], sizes = [64, 256], strides = [1, 1]} : vector<128x256xf32> to vector<64x256xf32>
    %34 = arith.negf %33 : vector<64x256xf32>
    %35 = math.exp %34 : vector<64x256xf32>
    %cst_25 = arith.constant 1.000000e+00 : f32
    %36 = vector.broadcast %cst_25 : f32 to vector<64x256xf32>
    %37 = arith.addf %36, %35 : vector<64x256xf32>
    %38 = arith.divf %36, %37 : vector<64x256xf32>
    %39 = vector.extract_strided_slice %32 {offsets = [64, 0], sizes = [64, 256], strides = [1, 1]} : vector<128x256xf32> to vector<64x256xf32>
    %40 = math.tanh %39 : vector<64x256xf32>
    %41 = arith.mulf %38, %40 : vector<64x256xf32>
    %c0_26 = arith.constant 0 : index
    %c0_27 = arith.constant 0 : index
    %42 = vector.load %arg11[%c0_26, %c0_27] : memref<128x64xbf16, #tpu.memory_space<vmem>>, vector<128x64xbf16>
    %43 = arith.truncf %41 : vector<64x256xf32> to vector<64x256xbf16>
    %cst_28 = arith.constant dense<0.000000e+00> : vector<128x256xf32>
    %44 = tpu.matmul %42, %43, %cst_28 {dimension_numbers = #tpu.dot_dimension_numbers<[1], [0], [0], [1], [0, 0, 1, 1], [], []>} : vector<128x64xbf16>, vector<64x256xbf16>, vector<128x256xf32> -> vector<128x256xf32>
    %c0_29 = arith.constant 0 : index
    %c0_30 = arith.constant 0 : index
    %45 = vector.load %arg12[%c0_29, %c0_30] : memref<128x1xf32, #tpu.memory_space<vmem>>, vector<128x1xf32>
    %46 = vector.broadcast %45 : vector<128x1xf32> to vector<128x256xf32>
    %47 = arith.addf %44, %46 : vector<128x256xf32>
    %48 = vector.extract_strided_slice %47 {offsets = [0, 0], sizes = [64, 256], strides = [1, 1]} : vector<128x256xf32> to vector<64x256xf32>
    %49 = arith.addf %1, %48 : vector<64x256xf32>
    %cst_31 = arith.constant 0.707106769 : f32
    %50 = vector.broadcast %cst_31 : f32 to vector<64x256xf32>
    %51 = arith.mulf %49, %50 : vector<64x256xf32>
    %c0_32 = arith.constant 0 : index
    %c0_33 = arith.constant 0 : index
    %c0_34 = arith.constant 0 : index
    %52 = vector.load %arg13[%c0_32, %c0_33, %c0_34] : memref<1x64x256xf32, #tpu.memory_space<vmem>>, vector<1x64x256xf32>
    %53 = vector.shape_cast %52 : vector<1x64x256xf32> to vector<64x256xf32>
    %54 = vector.shape_cast %51 : vector<64x256xf32> to vector<1x64x256xf32>
    tpu.vector_store %arg13[%c0_32, %c0_33, %c0_34], %54 {strides = array<i32>} : memref<1x64x256xf32, #tpu.memory_space<vmem>>, vector<1x64x256xf32>,
    %55 = vector.extract_strided_slice %47 {offsets = [64, 0], sizes = [64, 256], strides = [1, 1]} : vector<128x256xf32> to vector<64x256xf32>
    %56 = arith.truncf %55 : vector<64x256xf32> to vector<64x256xbf16>
    %c0_35 = arith.constant 0 : index
    %c0_36 = arith.constant 0 : index
    %c0_37 = arith.constant 0 : index
    %57 = vector.load %arg14[%c0_35, %c0_36, %c0_37] : memref<1x64x256xbf16, #tpu.memory_space<vmem>>, vector<1x64x256xbf16>
    %58 = vector.shape_cast %57 : vector<1x64x256xbf16> to vector<64x256xbf16>
    %59 = vector.shape_cast %56 : vector<64x256xbf16> to vector<1x64x256xbf16>
    tpu.vector_store %arg14[%c0_35, %c0_36, %c0_37], %59 {strides = array<i32>} : memref<1x64x256xbf16, #tpu.memory_space<vmem>>, vector<1x64x256xbf16>,
    return
  }
  func.func @transform_0(%arg0: i32, %arg1: i32) -> (i32, i32, i32) {
    %c0_i32 = arith.constant 0 : i32
    %c0_i32_0 = arith.constant 0 : i32
    return %arg0, %c0_i32, %arg1 : i32, i32, i32
  }
  func.func @transform_1(%arg0: i32, %arg1: i32) -> (i32, i32, i32) {
    %c0_i32 = arith.constant 0 : i32
    %c0_i32_0 = arith.constant 0 : i32
    %c0_i32_1 = arith.constant 0 : i32
    return %arg0, %c0_i32, %c0_i32_0 : i32, i32, i32
  }
  func.func @transform_2(%arg0: i32, %arg1: i32) -> (i32, i32, i32, i32) {
    %c0_i32 = arith.constant 0 : i32
    %c0_i32_0 = arith.constant 0 : i32
    %c0_i32_1 = arith.constant 0 : i32
    return %arg0, %arg1, %c0_i32, %c0_i32_0 : i32, i32, i32, i32
  }
  func.func @transform_3(%arg0: i32, %arg1: i32) -> (i32, i32, i32) {
    %c0_i32 = arith.constant 0 : i32
    %c0_i32_0 = arith.constant 0 : i32
    return %arg0, %c0_i32, %arg1 : i32, i32, i32
  }
  func.func @transform_4(%arg0: i32, %arg1: i32) -> (i32, i32) {
    %c0_i32 = arith.constant 0 : i32
    %c0_i32_0 = arith.constant 0 : i32
    %c0_i32_1 = arith.constant 0 : i32
    return %c0_i32, %c0_i32_0 : i32, i32
  }
  func.func @transform_5(%arg0: i32, %arg1: i32) -> (i32, i32) {
    %c0_i32 = arith.constant 0 : i32
    %c0_i32_0 = arith.constant 0 : i32
    %c0_i32_1 = arith.constant 0 : i32
    return %c0_i32, %c0_i32_0 : i32, i32
  }
  func.func @transform_6(%arg0: i32, %arg1: i32) -> (i32, i32) {
    %c0_i32 = arith.constant 0 : i32
    %c0_i32_0 = arith.constant 0 : i32
    %c0_i32_1 = arith.constant 0 : i32
    return %c0_i32, %c0_i32_0 : i32, i32
  }
  func.func @transform_7(%arg0: i32, %arg1: i32) -> (i32, i32) {
    %c0_i32 = arith.constant 0 : i32
    %c0_i32_0 = arith.constant 0 : i32
    %c0_i32_1 = arith.constant 0 : i32
    return %c0_i32, %c0_i32_0 : i32, i32
  }
  func.func @transform_8(%arg0: i32, %arg1: i32) -> (i32, i32) {
    %c0_i32 = arith.constant 0 : i32
    %c0_i32_0 = arith.constant 0 : i32
    %c0_i32_1 = arith.constant 0 : i32
    return %c0_i32, %c0_i32_0 : i32, i32
  }
  func.func @transform_9(%arg0: i32, %arg1: i32) -> (i32, i32) {
    %c0_i32 = arith.constant 0 : i32
    %c0_i32_0 = arith.constant 0 : i32
    %c0_i32_1 = arith.constant 0 : i32
    return %c0_i32, %c0_i32_0 : i32, i32
  }
  func.func @transform_10(%arg0: i32, %arg1: i32) -> (i32, i32) {
    %c0_i32 = arith.constant 0 : i32
    %c0_i32_0 = arith.constant 0 : i32
    %c0_i32_1 = arith.constant 0 : i32
    return %c0_i32, %c0_i32_0 : i32, i32
  }
  func.func @transform_11(%arg0: i32, %arg1: i32) -> (i32, i32, i32) {
    %c0_i32 = arith.constant 0 : i32
    %c0_i32_0 = arith.constant 0 : i32
    return %arg0, %c0_i32, %arg1 : i32, i32, i32
  }
  func.func @transform_12(%arg0: i32, %arg1: i32) -> (i32, i32, i32) {
    %c0_i32 = arith.constant 0 : i32
    %c0_i32_0 = arith.constant 0 : i32
    return %arg0, %c0_i32, %arg1 : i32, i32, i32
  }
}

</mosaic_0001>

<bundles_post_ra>
// kernel: tpu_custom_call.1
= control target key start
LH: loop header
LB: loop body
LE: loop exit
PB: predicated region body
PF: predicated region fallthrough
CT: control target
= control target key end

     0   :  { %s4188_s0 = inlined_call_operand.vmem [shape: f32[2,64,512], index: 0, kind: input, shape index: {}]   ;;  %s4189_s1 = inlined_call_operand.vmem [shape: f32[2,64,1], index: 1, kind: input, shape index: {}]   ;;  %s4190_s2 = inlined_call_operand.vmem [shape: bf16[2,2,64,128], index: 2, kind: input, shape index: {}]   ;;  %s4191_s3 = inlined_call_operand.vmem [shape: bf16[2,16,512], index: 3, kind: input, shape index: {}]   ;;  %s4192_s4 = inlined_call_operand.vmem [shape: bf16[128,64], index: 4, kind: input, shape index: {}]   ;;  %s4193_s5 = inlined_call_operand.vmem [shape: bf16[128,64], index: 5, kind: input, shape index: {}]   ;;  %s4194_s6 = inlined_call_operand.vmem [shape: bf16[128,64], index: 6, kind: input, shape index: {}]   ;;  %s4195_s7 = inlined_call_operand.vmem [shape: bf16[128,16], index: 7, kind: input, shape index: {}]   ;;  %s4196_s8 = inlined_call_operand.vmem [shape: f32[128,1], index: 8, kind: input, shape index: {}]   ;;  %s4197_s9 = inlined_call_operand.vmem [shape: bf16[128,64], index: 9, kind: input, shape index: {}]   ;;  %s4198_s10 = inlined_call_operand.vmem [shape: f32[128,1], index: 10, kind: input, shape index: {}]   ;;  %s4199_s11 = inlined_call_operand.hbm [shape: f32[2,64,512], index: 11, kind: output, shape index: {0}]   ;;  %s4200_s12 = inlined_call_operand.hbm [shape: bf16[2,64,512], index: 12, kind: output, shape index: {1}]  }
   0x1   :  { %4209 = sst [smem:[#allocation15_spill]] %s4188_s0 }
   0x2   :  { %4210 = sst [smem:[#allocation16_spill]] %s4189_s1 }
   0x3   :  { %4211 = sst [smem:[#allocation17_spill]] %s4200_s12 }
   0x4   :  { %18 = vsyncpa [#allocation5], 0 }
   0x5   :  { %20 = vsyncpa [#allocation5 + $0x1], 0 }
   0x6   :  { %21 = vsyncpa [#allocation7], 0 }
   0x7   :  { %23 = vsyncpa [#allocation7 + $0x1], 0  ;;  %s3421_s21 = smov 0   ;;  %s3423_s22 = smov 0  }
   0x8   :  { %s3425_s23 = smov 0   ;;  %s3427_s24 = smov 0  }
   0x9   :  { %s3429_s25 = smov 0   ;;  %s3431_s26 = smov 0  }
   0xa   :  { %s3433_s27 = smov 0   ;;  %s3435_s28 = smov 0  }
   0xb LB: > { %4212 = sst [smem:[#allocation10_spill]] %s3316_s21  ;;  %s2587_s29 = sadd.s32 4294967295, %s3344_s28   ;;  %s3344_s28 = sphi %s3435_s28, %s29_s28   ;;  %s3340_s27 = sphi %s3433_s27, %s4236_s27   ;;  %s3336_s26 = sphi %s3431_s26, %s4235_s26   ;;  %s3332_s25 = sphi %s3429_s25, %s4234_s25   ;;  %s3328_s24 = sphi %s3427_s24, %s4233_s24   ;;  %s3324_s23 = sphi %s3425_s23, %s4232_s23   ;;  %s3320_s22 = sphi %s3423_s22, %s4231_s22   ;;  %s3316_s21 = sphi %s3421_s21, %s4230_s21  }
   0xc   : > { %s2588_s30 = sadd.s32 4294967294, %s3344_s28   ;;  %s38_s13 = sadd.s32 1, %s3336_s26 }
   0xd   : > { %p39_p0 = scmp.ge.s32.totalorder %s38_s13, 2  ;;  %s41_s14 = sadd.s32 1, %s3340_s27 }
   0xe   : > { %p57_p1 = scmp.ne.s32.totalorder %s3324_s23, %s3320_s22  ;;  %p58_p2 = scmp.eq.s32.totalorder %s3344_s28, 0 }
   0xf   : > { %s4238_s13 = smov (%p39_p0, %s38_s13), 0  ;;  %s4240_s14 = smov (!%p39_p0, %s41_s14), %s3340_s27 }
  0x10   : > { %4213 = sst [smem:[#allocation11_spill]] %s4238_s13  ;;  %s46_s15 = ssub.s32 %s3336_s26, %s4238_s13 }
  0x11   : > { %p3473_p3 = por %p58_p2, %p57_p1  ;;  %p43_p4 = scmp.ge.s32.totalorder %s4240_s14, 2 }
  0x12   : > { %p318_p5 = scmp.eq.s32.totalorder %s2587_s29, 3  ;;  %p323_p6 = scmp.ne.s32.totalorder %s3320_s22, %s3316_s21 }
  0x13   : > { %p324_p7 = scmp.eq.s32.totalorder %s2588_s30, 3  ;;  %s4242_s14 = smov (%p43_p4, %s4240_s14), 0 }
  0x14   : > { %4215 = sst [smem:[#allocation12_spill]] %s4242_s14  ;;  %p3481_p8 = por %p318_p5, %p57_p1 }
  0x15   : > { %p3485_p9 = por %p324_p7, %p323_p6  ;;  %s45_s19 = ssub.s32 %s3340_s27, %s4242_s14 }
  0x16   : > { %s4216_s17 = scalar_select %p3481_p8, 1, 0 }
  0x17   : > { %s4218_s18 = scalar_select %p3485_p9, 1, 0 }
  0x18   : > { %4217 = sst [smem:[#allocation13_spill]] %s4216_s17  ;;  %s47_s20 = sor.u32 %s46_s15, %s45_s19 }
  0x19   : > { %4219 = sst [smem:[#allocation14_spill]] %s4218_s18  ;;  %s50_s13 = sadd.s32 1, %s3324_s23 }
  0x1a   : > { %p48_p10 = scmp.eq.s32.totalorder %s47_s20, 0  ;;  %p2590_p11 = scmp.ge.s32.totalorder %s3344_s28, 4 }
  0x1c   : > { %s3493_s12 = scalar_select %p48_p10, %s3324_s23, %s50_s13  }
  0x1d   : > { %389 = sbr.rel (%p2590_p11) target bundleno = 62 (0x3e), region = 44 }
  0x24   : > { %392 = sbr.rel (!%p3473_p3) target bundleno = 54 (0x36), region = 48  ;;  %s394_s29 = sand.u32 (%p3473_p3), 1, %s3324_s23  }
  0x25   : > { %s2592_s30 = sshll.u32 (%p3473_p3), %s3336_s26, 1  ;;  %s2591_s21 = sshll.u32 (%p3473_p3), %s394_s29, 7 }
  0x26   : > { %s2593_s17 = sshll.u32 (%p3473_p3), %s3340_s27, 5  ;;  %s4220_s0 = sld [smem:[#allocation15_spill]] (%p3473_p3) }
  0x27   : > { %s399_s18 = sadd.s32 (%p3473_p3), %s2593_s17, %s2592_s30  ;;  %s396_s20 = scalar_lea.vmem (%p3473_p3), [#allocation2], %s2591_s21 }
  0x28   : > { %s2594_s14 = sshll.u32 (%p3473_p3), %s399_s18, 3 }
  0x2c   : > { %s3504_s13 = scalar_lea.vmem %s4220_s0, %s2594_s14 }
  0x2d   : > { %v414_v0 = vld [vmem:[%s3504_s13] sm:$0xff]  ;;  %v416_v1 = vld [vmem:[%s3504_s13 + $0x8] sm:$0xff] }
  0x2e   : > { %v418_v2 = vld [vmem:[%s3504_s13 + $0x20] sm:$0xff]  ;;  %415 = vst [vmem:[%s396_s20] sm:$0xff] %v414_v0  ;;  %417 = vst [vmem:[%s396_s20 + $0x8] sm:$0xff] %v416_v1  ;;  %v420_v3 = vld [vmem:[%s3504_s13 + $0x28] sm:$0xff] }
  0x2f   : > { %419 = vst [vmem:[%s396_s20 + $0x10] sm:$0xff] %v418_v2  ;;  %v422_v4 = vld [vmem:[%s3504_s13 + $0x40] sm:$0xff]  ;;  %v424_v5 = vld [vmem:[%s3504_s13 + $0x48] sm:$0xff]  ;;  %421 = vst [vmem:[%s396_s20 + $0x18] sm:$0xff] %v420_v3 }
  0x30   : > { %423 = vst [vmem:[%s396_s20 + $0x20] sm:$0xff] %v422_v4  ;;  %425 = vst [vmem:[%s396_s20 + $0x28] sm:$0xff] %v424_v5  ;;  %v426_v6 = vld [vmem:[%s3504_s13 + $0x60] sm:$0xff]  ;;  %v428_v7 = vld [vmem:[%s3504_s13 + $0x68] sm:$0xff] }
  0x31   : > { %v430_v8 = vld [vmem:[%s3504_s13 + $0x80] sm:$0xff]  ;;  %427 = vst [vmem:[%s396_s20 + $0x30] sm:$0xff] %v426_v6  ;;  %429 = vst [vmem:[%s396_s20 + $0x38] sm:$0xff] %v428_v7  ;;  %v432_v9 = vld [vmem:[%s3504_s13 + $0x88] sm:$0xff] }
  0x32   : > { %431 = vst [vmem:[%s396_s20 + $0x40] sm:$0xff] %v430_v8  ;;  %v434_v10 = vld [vmem:[%s3504_s13 + $0xa0] sm:$0xff]  ;;  %v436_v11 = vld [vmem:[%s3504_s13 + $0xa8] sm:$0xff]  ;;  %433 = vst [vmem:[%s396_s20 + $0x48] sm:$0xff] %v432_v9 }
  0x33   : > { %435 = vst [vmem:[%s396_s20 + $0x50] sm:$0xff] %v434_v10  ;;  %437 = vst [vmem:[%s396_s20 + $0x58] sm:$0xff] %v436_v11  ;;  %v438_v12 = vld [vmem:[%s3504_s13 + $0xc0] sm:$0xff]  ;;  %v440_v13 = vld [vmem:[%s3504_s13 + $0xc8] sm:$0xff] }
  0x34   : > { %v442_v14 = vld [vmem:[%s3504_s13 + $0xe0] sm:$0xff]  ;;  %439 = vst [vmem:[%s396_s20 + $0x60] sm:$0xff] %v438_v12  ;;  %441 = vst [vmem:[%s396_s20 + $0x68] sm:$0xff] %v440_v13  ;;  %v444_v15 = vld [vmem:[%s3504_s13 + $0xe8] sm:$0xff] }
  0x35   : > { %443 = vst [vmem:[%s396_s20 + $0x70] sm:$0xff] %v442_v14  ;;  %445 = vst [vmem:[%s396_s20 + $0x78] sm:$0xff] %v444_v15 }
  0x36 PF: > { %471 = sbr.rel (!%p3473_p3) target bundleno = 62 (0x3e), region = 79  ;;  %s473_s21 = sand.u32 (%p3473_p3), 1, %s3324_s23  }
  0x37   : > { %s2596_s14 = sshll.u32 (%p3473_p3), %s3336_s26, 1  ;;  %s2595_s17 = sshll.u32 (%p3473_p3), %s473_s21, 4 }
  0x38   : > { %s2597_s18 = sshll.u32 (%p3473_p3), %s3340_s27, 3  ;;  %s475_s13 = scalar_lea.vmem (%p3473_p3), [#allocation3], %s2595_s17 }
  0x39   : > { %s478_s29 = sadd.s32 (%p3473_p3), %s2597_s18, %s2596_s14 }
  0x3a   : > { %s2598_s30 = sshll.u32 (%p3473_p3), %s478_s29, 2 }
  0x3b   : > { %s480_s0 = scalar_lea.vmem (%p3473_p3), %s4191_s3, %s2598_s30 }
  0x3c   : > { %v510_v16 = vld [vmem:[%s480_s0] sm:$0xff] (%p3473_p3)  ;;  %v512_v17 = vld [vmem:[%s480_s0 + $0x10] sm:$0xff] (%p3473_p3) }
  0x3d   : > { %511 = vst [vmem:[%s475_s13] sm:$0xff] %v510_v16  ;;  %513 = vst [vmem:[%s475_s13 + $0x8] sm:$0xff] %v512_v17 }
  0x3e PF: > { %p2599_p12 = scmp.ge.s32.totalorder %s3344_s28, 1  ;;  %p518_p13 = scmp.lt.s32.totalorder %s3344_s28, 5 }
  0x40   : > { %p519_p0 = pnand %p2599_p12, %p518_p13 }
  0x41   : > { %p597_p1 = scmp.lt.s32.totalorder (!%p519_p0), %s3332_s25, 1  ;;  %v3346_v18 = vmov (!%p519_p0), 0   ;;  %p604_p2 = scmp.lt.s32.totalorder (!%p519_p0), %s3328_s24, 1  ;;  %vm939_vm0 = vcmask (!%p519_p0), 523264   ;;  %vm1547_vm3 = vcmask (!%p519_p0), 130048  }
  0x42   : > { %522 = sbr.rel (%p519_p0) target bundleno = 1005 (0x3ed), region = 117  ;;  %2942 = vset.pattern.permute.xlu1 (!%p519_p0), %v3346_v18  ;;  %2941 = vset.pattern.permute.xlu0 (!%p519_p0), %v3346_v18  ;;  %s4221_s1 = sld [smem:[#allocation16_spill]] (!%p519_p0) }
  0x43   : > { %1173 = vmatprep.mubr.bf16.mxu0 (!%p519_p0), %v3346_v18  ;;  %996 = vmatprep.mubr.bf16.mxu1 (!%p519_p0), %v3346_v18 }
  0x49   : > { %s598_s0 = scalar_select %p597_p1, %s3332_s25, 1 }
  0x4a   : > { %s605_s18 = scalar_select %p604_p2, %s3328_s24, 1 }
  0x4b   : > { %s2725_s16 = sshll.u32 %s598_s0, 6  ;;  %s2607_s17 = sshll.u32 %s598_s0, 4 }
  0x4c   : > { %s601_s14 = scalar_lea.vmem %s4221_s1, %s2725_s16  ;;  %s2606_s29 = sshll.u32 %s605_s18, 3 }
  0x4d   : > { %v633_v19 = vld [vmem:[%s601_s14 + $0x10] sm:$0xff]  ;;  %v631_v20 = vld [vmem:[%s601_s14] sm:$0xff]  ;;  %v634_v21 = vld [vmem:[%s601_s14 + $0x18] sm:$0xff]  ;;  %s608_s30 = sadd.s32 %s2607_s17, %s2606_s29  ;;  %s3347_s0 = smov 126  }
  0x4e   : > { %651 = vperm.xlu1 %2942, %v633_v19   ;;  %641 = vperm.xlu0 %2941, %v631_v20   ;;  %v632_v22 = vld [vmem:[%s601_s14 + $0x8] sm:$0xff]  ;;  %v635_v24 = vld [vmem:[%s601_s14 + $0x20] sm:$0xff]  ;;  %s2608_s15 = sshll.u32 %s608_s30, 2  ;;  %v638_v27 = vld [vmem:[%s601_s14 + $0x38] sm:$0xff]  ;;  %s3564_s16 = sand.u32 1, %s3320_s22  }
  0x4f   : > { %v636_v23 = vld [vmem:[%s601_s14 + $0x28] sm:$0xff]  ;;  %s3546_s20 = scalar_lea.vmem %s4190_s2, %s2608_s15  ;;  %v637_v28 = vld [vmem:[%s601_s14 + $0x30] sm:$0xff]  ;;  %s4208_s21 = sshll.u32 %s3564_s16, 7 }
  0x50   : > { %v2735_v25 = vld [vmem:[%s3546_s20] sm:$0xff]   ;;  %v2750_v26 = vld [vmem:[%s3546_s20 + $0x8] sm:$0xff]   ;;  %v2751_v31 = vld [vmem:[%s3546_s20 + $0x10] sm:$0xff]   ;;  %s3569_s14 = scalar_lea.vmem [#allocation2], %s4208_s21  ;;  %s3348_s29 = smov 2  }
  0x51   : > { %v2736_v29 = vunpack.c.l.bf16 %v2735_v25  ;;  %v2737_v30 = vunpack.c.h.bf16 %v2735_v25  ;;  %v2740_v32 = vunpack.c.l.bf16 %v2750_v26  ;;  %v2741_v33 = vunpack.c.h.bf16 %v2750_v26  ;;  %v620_v40 = vld [vmem:[%s3569_s14 + $0x28] sm:$0xff]  ;;  %v615_v42 = vld [vmem:[%s3569_s14] sm:$0xff]  ;;  %v622_v44 = vld [vmem:[%s3569_s14 + $0x38] sm:$0xff]  ;;  %s2601_s19 = sshll.u32 %s3564_s16, 4  ;;  %s2718_s21 = sshll.u32 %s3332_s25, 5 }
  0x52   : > { %656 = vperm.xlu1 %2942, %v634_v21   ;;  %646 = vperm.xlu0 %2941, %v632_v22   ;;  %v2744_v35 = vunpack.c.l.bf16 %v2751_v31  ;;  %v2745_v36 = vunpack.c.h.bf16 %v2751_v31  ;;  %v616_v43 = vld [vmem:[%s3569_s14 + $0x8] sm:$0xff]  ;;  %v617_v45 = vld [vmem:[%s3569_s14 + $0x10] sm:$0xff]  ;;  %v618_v46 = vld [vmem:[%s3569_s14 + $0x18] sm:$0xff] }
  0x53   : > { %v3551_v34 = vpack.i.bf16 %v2737_v30, %v2736_v29  ;;  %v3553_v37 = vpack.i.bf16 %v2741_v33, %v2740_v32  ;;  %v619_v47 = vld [vmem:[%s3569_s14 + $0x20] sm:$0xff]  ;;  %v621_v49 = vld [vmem:[%s3569_s14 + $0x30] sm:$0xff]  ;;  %v626_v59 = vld [vmem:[%s3569_s14 + $0x58] sm:$0xff] }
  0x54   : > { %v3557_v38 = vpack.i.bf16 %v2745_v36, %v2744_v35  ;;  %v624_v60 = vld [vmem:[%s3569_s14 + $0x48] sm:$0xff]  ;;  %v625_v3 = vld [vmem:[%s3569_s14 + $0x50] sm:$0xff]  ;;  %v623_v5 = vld [vmem:[%s3569_s14 + $0x40] sm:$0xff] }
  0x55   : > { %v630_v7 = vld [vmem:[%s3569_s14 + $0x78] sm:$0xff]  ;;  %v628_v8 = vld [vmem:[%s3569_s14 + $0x68] sm:$0xff]  ;;  %v629_v12 = vld [vmem:[%s3569_s14 + $0x70] sm:$0xff] }
  0x56   : > { %666 = vperm.xlu1 %2942, %v636_v23   ;;  %661 = vperm.xlu0 %2941, %v635_v24   ;;  %v627_v14 = vld [vmem:[%s3569_s14 + $0x60] sm:$0xff]  ;;  %v2752_v26 = vld [vmem:[%s3546_s20 + $0x18] sm:$0xff]  }
  0x57   : > { %v2748_v30 = vunpack.c.l.bf16 %v2752_v26  ;;  %v2749_v31 = vunpack.c.h.bf16 %v2752_v26 }
  0x59   : > { %v2988_v36 = vpack.i.bf16 %v2749_v31, %v2748_v30 }
  0x5a   : > { %676 = vperm.xlu1 %2942, %v638_v27   ;;  %671 = vperm.xlu0 %2941, %v637_v28  }
  0x5e   : > { %2944 = vrot.lane.b32.xlu1 %v3551_v34, %s3347_s0  ;;  %2949 = vrot.lane.b32.xlu0 %v3553_v37, %s3347_s0 }
  0x62   : > { %2954 = vrot.lane.b32.xlu1 %v3557_v38, %s3347_s0 }
  0xcd   : > { %v652_v39 = vpop.permute.xlu1 %651  ;;  %v642_v41 = vpop.permute.xlu0 %641 }
  0xce   : > { %v684_v48 = vadd.f32 %v652_v39, %v620_v40  ;;  %v679_v50 = vadd.f32 %v642_v41, %v615_v42  ;;  %v680_v53 = vadd.f32 %v642_v41, %v616_v43  ;;  %v683_v57 = vadd.f32 %v652_v39, %v619_v47  ;;  %v3063_v39 = vld [vmem:[%s4193_s5] sm:$0xff]   ;;  %v3064_v40 = vld [vmem:[%s4193_s5 + $0x8] sm:$0xff]   ;;  %v1720_v41 = vld [vmem:[%s4196_s8 + $0x18] sm:$0xff] }
  0xcf   : > { %v1717_v42 = vld [vmem:[%s4196_s8] sm:$0xff]  ;;  %v1722_v43 = vld [vmem:[%s4196_s8 + $0x28] sm:$0xff] }
  0xd0   : > { %v1726_v47 = vld [vmem:[%s4196_s8 + $0x48] sm:$0xff] }
  0xd1   : > { %v657_v51 = vpop.permute.xlu1 %656  ;;  %v647_v52 = vpop.permute.xlu0 %646 }
  0xd2   : > { %v686_v54 = vadd.f32 %v657_v51, %v622_v44  ;;  %v681_v55 = vadd.f32 %v647_v52, %v617_v45  ;;  %v682_v56 = vadd.f32 %v647_v52, %v618_v46  ;;  %v685_v58 = vadd.f32 %v657_v51, %v621_v49  ;;  %v1719_v44 = vld [vmem:[%s4196_s8 + $0x10] sm:$0xff]  ;;  %v1724_v45 = vld [vmem:[%s4196_s8 + $0x38] sm:$0xff]  ;;  %v1721_v46 = vld [vmem:[%s4196_s8 + $0x20] sm:$0xff] }
  0xd3   : > { %v1728_v49 = vld [vmem:[%s4196_s8 + $0x58] sm:$0xff]  ;;  %v1730_v51 = vld [vmem:[%s4196_s8 + $0x68] sm:$0xff]  ;;  %v1727_v52 = vld [vmem:[%s4196_s8 + $0x50] sm:$0xff] }
  0xd4   : > { %v3581_v61 = vpack.i.bf16 %v686_v54, %v684_v48  ;;  %v2958_v62 = vpack.i.bf16 %v682_v56, %v680_v53  ;;  %v3583_v63 = vpack.c.bf16 %v682_v56, %v680_v53  ;;  %v3585_v0 = vpack.c.bf16 %v681_v55, %v679_v50  ;;  %v1732_v53 = vld [vmem:[%s4196_s8 + $0x78] sm:$0xff]  ;;  %v1731_v56 = vld [vmem:[%s4196_s8 + $0x70] sm:$0xff] }
  0xd5   : > { %v667_v1 = vpop.permute.xlu1 %666  ;;  %v662_v2 = vpop.permute.xlu0 %661  ;;  %v3595_v9 = vpack.c.bf16 %v686_v54, %v684_v48  ;;  %v2973_v10 = vpack.i.bf16 %v685_v58, %v683_v57  ;;  %v2963_v15 = vpack.i.bf16 %v681_v55, %v679_v50  ;;  %v3601_v16 = vpack.c.bf16 %v685_v58, %v683_v57  ;;  %v1723_v48 = vld [vmem:[%s4196_s8 + $0x30] sm:$0xff]  ;;  %v1725_v50 = vld [vmem:[%s4196_s8 + $0x40] sm:$0xff]  ;;  %v1998_v55 = vld [vmem:[%s4198_s10 + $0x8] sm:$0xff] }
  0xd6   : > { %2969 = vrot.lane.b32.xlu1 %v3581_v61, %s3347_s0  ;;  %v690_v4 = vadd.f32 %v667_v1, %v626_v59  ;;  %v688_v6 = vadd.f32 %v662_v2, %v624_v60  ;;  %2959 = vrot.lane.b32.xlu0 %v2958_v62, %s3347_s0  ;;  %v689_v17 = vadd.f32 %v667_v1, %v625_v3  ;;  %v1729_v54 = vld [vmem:[%s4196_s8 + $0x60] sm:$0xff]  ;;  %v2000_v57 = vld [vmem:[%s4198_s10 + $0x18] sm:$0xff] }
  0xd7   : > { %1141 = vmatprep.subr.bf16.mxu0 %v3583_v63  ;;  %v687_v19 = vadd.f32 %v662_v2, %v623_v5  ;;  %v1997_v58 = vld [vmem:[%s4198_s10] sm:$0xff]  ;;  %v2002_v59 = vld [vmem:[%s4198_s10 + $0x28] sm:$0xff]  ;;  %v1999_v60 = vld [vmem:[%s4198_s10 + $0x10] sm:$0xff] }
  0xd8   : > { %1142 = vmatpush1.bf16.msra.mxu0 %v3585_v0  ;;  %v3605_v22 = vpack.c.bf16 %v690_v4, %v688_v6  ;;  %v2978_v27 = vpack.i.bf16 %v690_v4, %v688_v6  ;;  %v2006_v1 = vld [vmem:[%s4198_s10 + $0x48] sm:$0xff]  ;;  %v2003_v2 = vld [vmem:[%s4198_s10 + $0x30] sm:$0xff]  ;;  %v2008_v3 = vld [vmem:[%s4198_s10 + $0x58] sm:$0xff] }
  0xd9   : > { %v677_v11 = vpop.permute.xlu1 %676  ;;  %v672_v13 = vpop.permute.xlu0 %671  ;;  %1143 = vmatprep.subr.bf16.mxu0 %v3595_v9  ;;  %v3611_v28 = vpack.c.bf16 %v689_v17, %v687_v19  ;;  %v2983_v33 = vpack.i.bf16 %v689_v17, %v687_v19  ;;  %v2005_v4 = vld [vmem:[%s4198_s10 + $0x40] sm:$0xff]  ;;  %v2010_v5 = vld [vmem:[%s4198_s10 + $0x68] sm:$0xff]  ;;  %v2007_v6 = vld [vmem:[%s4198_s10 + $0x50] sm:$0xff] }
  0xda   : > { %v694_v20 = vadd.f32 %v677_v11, %v630_v7  ;;  %v692_v21 = vadd.f32 %v672_v13, %v628_v8  ;;  %2974 = vrot.lane.b32.xlu1 %v2973_v10, %s3347_s0  ;;  %2964 = vrot.lane.b32.xlu0 %v2963_v15, %s3347_s0  ;;  %v693_v23 = vadd.f32 %v677_v11, %v629_v12  ;;  %v2012_v7 = vld [vmem:[%s4198_s10 + $0x78] sm:$0xff]  ;;  %v2009_v8 = vld [vmem:[%s4198_s10 + $0x60] sm:$0xff]  ;;  %v767_v12 = vlaneseq }
  0xdb   : > { %v691_v24 = vadd.f32 %v672_v13, %v627_v14 }
  0xdc   : > { %1144 = vmatpush1.bf16.msra.mxu0 %v3601_v16  ;;  %v2993_v25 = vpack.i.bf16 %v694_v20, %v692_v21  ;;  %v3614_v29 = vpack.c.bf16 %v694_v20, %v692_v21 }
  0xdd   : > { %1145 = vmatprep.subr.bf16.mxu0 %v3605_v22  ;;  %v2998_v32 = vpack.i.bf16 %v693_v23, %v691_v24  ;;  %v3619_v35 = vpack.c.bf16 %v693_v23, %v691_v24  ;;  %v2945_v11 = vpop.permute.xlu1 %2944  ;;  %v2950_v14 = vpop.permute.xlu0 %2949 }
  0xde   : > { %2994 = vrot.lane.b32.xlu1 %v2993_v25, %s3347_s0  ;;  %2979 = vrot.lane.b32.xlu0 %v2978_v27, %s3347_s0  ;;  %v2947_v23 = vunpack.i.h.bf16 %v2945_v11  ;;  %v2946_v24 = vunpack.i.l.bf16 %v2945_v11  ;;  %v2951_v30 = vunpack.i.l.bf16 %v2950_v14 }
  0xe0   : > { %1146 = vmatpush1.bf16.msra.mxu0 %v3611_v28 }
  0xe1   : > { %1147 = vmatprep.subr.bf16.mxu0 %v3614_v29  ;;  %v2955_v13 = vpop.permute.xlu1 %2954 }
  0xe2   : > { %2999 = vrot.lane.b32.xlu1 %v2998_v32, %s3347_s0  ;;  %2984 = vrot.lane.b32.xlu0 %v2983_v33, %s3347_s0 }
  0xe4   : > { %1148 = vmatpush1.bf16.msra.mxu0 %v3619_v35 }
  0xe6   : > { %3009 = vrot.lane.b32.xlu1 %v3553_v37, %s3348_s29  ;;  %2989 = vrot.lane.b32.xlu0 %v2988_v36, %s3347_s0  ;;  %v3065_v37 = vld [vmem:[%s4193_s5 + $0x10] sm:$0xff]   ;;  %s3641_s0 = scalar_lea.vmem [#allocation3], %s2601_s19  ;;  %s2717_s19 = sshll.u32 %s3328_s24, 1 }
  0xe7   : > { %2633 = vmatmul.mubr.msk.bf16.vlgmr.msra.gmra.mrb[0].mxu0 %vm939_vm0, %v3063_v39  ;;  %s4068_s13 = sadd.s32 %s2718_s21, %s2717_s19 }
  0xe8   : > { %1183 = vmatprep.mubr.bf16.mxu0 %v3346_v18  ;;  %s2719_s25 = sshll.u32 %s4068_s13, 7 }
  0xe9   : > { %s4084_s17 = scalar_lea.hbm %s4199_s11, %s2719_s25 }
  0xea   : > { %3024 = vrot.lane.b32.xlu1 %v2958_v62, %s3348_s29  ;;  %3004 = vrot.lane.b32.xlu0 %v3551_v34, %s3348_s29  ;;  %v1718_v34 = vld [vmem:[%s4196_s8 + $0x8] sm:$0xff]  ;;  %v2001_v62 = vld [vmem:[%s4198_s10 + $0x20] sm:$0xff] }
  0xee   : > { %3029 = vrot.lane.b32.xlu1 %v2973_v10, %s3348_s29  ;;  %3014 = vrot.lane.b32.xlu0 %v3557_v38, %s3348_s29  ;;  %v3066_v38 = vld [vmem:[%s4193_s5 + $0x18] sm:$0xff]   ;;  %v2011_v10 = vld [vmem:[%s4198_s10 + $0x70] sm:$0xff] }
  0xef   : > { %2634 = vmatmul.mubr.msk.bf16.gmra.mrb[4].mxu0 %vm939_vm0, %v3064_v40 }
  0xf0   : > { %1193 = vmatprep.mubr.bf16.mxu0 %v3346_v18 }
  0xf2   : > { %3044 = vrot.lane.b32.xlu1 %v2978_v27, %s3348_s29  ;;  %3019 = vrot.lane.b32.xlu0 %v2963_v15, %s3348_s29  ;;  %v3747_v15 = vand.u32 127, %v767_v12  ;;  %v2952_v27 = vunpack.i.h.bf16 %v2950_v14 }
  0xf4   : > { %vm842_vm1 = vcmp.lt.s32.totalorder %v3747_v15, 126  ;;  %vm769_vm2 = vcmp.lt.s32.totalorder %v3747_v15, 2  ;;  %v3075_v15 = vld [vmem:[%s4192_s4 + $0x8] sm:$0xff]  }
  0xf6   : > { %3049 = vrot.lane.b32.xlu1 %v2998_v32, %s3348_s29  ;;  %3034 = vrot.lane.b32.xlu0 %v3581_v61, %s3348_s29  ;;  %v2004_v61 = vld [vmem:[%s4198_s10 + $0x38] sm:$0xff] }
  0xf7   : > { %2635 = vmatmul.mubr.msk.bf16.gmra.mrb[8].mxu0 %vm939_vm0, %v3065_v37 }
  0xf8   : > { %1203 = vmatprep.mubr.bf16.mxu0 %v3346_v18 }
  0xfa   : > { %3059 = vrot.lane.b32.xlu1 %v2988_v36, %s3348_s29  ;;  %3039 = vrot.lane.b32.xlu0 %v2983_v33, %s3348_s29 }
  0xfe   : > { %1740 = vperm.xlu1 %2942, %v1718_v34   ;;  %3054 = vrot.lane.b32.xlu0 %v2993_v25, %s3348_s29  ;;  %s4222_s29 = sshll.u32 %s3564_s16, 7 }
  0xff   : > { %2636 = vmatmul.mubr.msk.bf16.gmra.mrb[12].mxu0 %vm939_vm0, %v3066_v38  ;;  %s4045_s15 = scalar_lea.vmem [#allocation4], %s4222_s29  ;;  %s3349_s29 = smov [#allocation4]  }
 0x100   : > { %1366 = vmatprep.mubr.bf16.mxu0 %v3346_v18  ;;  %s2395_s24 = sshll.u32 %s4045_s15, 4  ;;  %s3222_s19 = sshll.u32 %s3349_s29, 4  ;;  %s4078_s24 = int_to_ptr.vmem [resolvable:$true] %s2395_s24  ;;  %s3223_s19 = int_to_ptr.vmem [resolvable:$false] %s3222_s19 }
 0x101   : > { %s3218_s30 = scalar_lea.vmem %s4078_s24, 2048  ;;  %s3224_s21 = scalar_lea.vmem %s3223_s19, 4096 }
 0x102   : > { %1750 = vperm.xlu1 %2942, %v1720_v41   ;;  %1735 = vperm.xlu0 %2941, %v1717_v42   ;;  %p3219_p3 = scmp.ne.s32.totalorder %s4078_s24, %s3218_s30  ;;  %p3225_p6 = scmp.lt.s32.totalorder %s4078_s24, %s3223_s19 }
 0x103   : > { %p3226_p7 = scmp.lt.s32.totalorder %s3224_s21, %s3218_s30 }
 0x104   : > { %p3220_p4 = pnand %p3219_p3, %p3481_p8 }
 0x105   : > { %p3227_p10 = por %p3226_p7, %p3225_p6 }
 0x106   : > { %1760 = vperm.xlu1 %2942, %v1722_v43   ;;  %1745 = vperm.xlu0 %2941, %v1719_v44   ;;  %p3221_p5 = pneg %p3220_p4 }
 0x108   : > { %p3228_p11 = pnand %p3227_p10, %p3221_p5 }
 0x10a   : > { %1770 = vperm.xlu1 %2942, %v1724_v45   ;;  %1755 = vperm.xlu0 %2941, %v1721_v46   ;;  %v2957_v46 = vunpack.i.h.bf16 %v2955_v13 }
 0x10e   : > { %1780 = vperm.xlu1 %2942, %v1726_v47   ;;  %1765 = vperm.xlu0 %2941, %v1723_v48   ;;  %v2956_v47 = vunpack.i.l.bf16 %v2955_v13 }
 0x112   : > { %1790 = vperm.xlu1 %2942, %v1728_v49   ;;  %1775 = vperm.xlu0 %2941, %v1725_v50  }
 0x116   : > { %1800 = vperm.xlu1 %2942, %v1730_v51   ;;  %1785 = vperm.xlu0 %2941, %v1727_v52  }
 0x11a   : > { %1810 = vperm.xlu1 %2942, %v1732_v53   ;;  %1795 = vperm.xlu0 %2941, %v1729_v54  }
 0x11e   : > { %2020 = vperm.xlu1 %2942, %v1998_v55   ;;  %1805 = vperm.xlu0 %2941, %v1731_v56  }
 0x122   : > { %2030 = vperm.xlu1 %2942, %v2000_v57   ;;  %2015 = vperm.xlu0 %2941, %v1997_v58  }
 0x126   : > { %2040 = vperm.xlu1 %2942, %v2002_v59   ;;  %2025 = vperm.xlu0 %2941, %v1999_v60  }
 0x12a   : > { %2050 = vperm.xlu1 %2942, %v2004_v61   ;;  %2035 = vperm.xlu0 %2941, %v2001_v62  }
 0x12e   : > { %2060 = vperm.xlu1 %2942, %v2006_v1   ;;  %2045 = vperm.xlu0 %2941, %v2003_v2  }
 0x132   : > { %2070 = vperm.xlu1 %2942, %v2008_v3   ;;  %2055 = vperm.xlu0 %2941, %v2005_v4  }
 0x136   : > { %2080 = vperm.xlu1 %2942, %v2010_v5   ;;  %2065 = vperm.xlu0 %2941, %v2007_v6  }
 0x13a   : > { %2090 = vperm.xlu1 %2942, %v2012_v7   ;;  %2075 = vperm.xlu0 %2941, %v2009_v8  }
 0x13e   : > { %2085 = vperm.xlu0 %2941, %v2011_v10  }
 0x148   : > { %v2970_v17 = vpop.permute.xlu1 %2969  ;;  %v2960_v21 = vpop.permute.xlu0 %2959 }
 0x149   : > { %v2972_v19 = vunpack.i.h.bf16 %v2970_v17  ;;  %v2971_v20 = vunpack.i.l.bf16 %v2970_v17  ;;  %v2962_v25 = vunpack.i.h.bf16 %v2960_v21  ;;  %v2961_v26 = vunpack.i.l.bf16 %v2960_v21 }
 0x14b   : > { %v843_v32 = vsel %vm842_vm1, %v2961_v26, %v2946_v24  ;;  %v844_v33 = vsel %vm842_vm1, %v2962_v25, %v2947_v23  ;;  %v845_v40 = vsel %vm842_vm1, %v2971_v20, %v2951_v30  ;;  %v846_v37 = vsel %vm842_vm1, %v2972_v19, %v2952_v27  ;;  %v3071_v24 = vld [vmem:[%s3641_s0 + $0x4] ss:$8 sps:$4 sm:$0xff]   ;;  %v3069_v30 = vld [vmem:[%s3641_s0] ss:$8 sps:$4 sm:$0xff]  }
 0x14c   : > { %v2975_v31 = vpop.permute.xlu1 %2974  ;;  %v2965_v36 = vpop.permute.xlu0 %2964  ;;  %v860_v39 = vpack.c.bf16 %v844_v33, %v843_v32  ;;  %v862_v50 = vpack.c.bf16 %v846_v37, %v845_v40 }
 0x14d   : > { %v2977_v34 = vunpack.i.h.bf16 %v2975_v31  ;;  %v2976_v38 = vunpack.i.l.bf16 %v2975_v31  ;;  %v2967_v41 = vunpack.i.h.bf16 %v2965_v36  ;;  %v2966_v42 = vunpack.i.l.bf16 %v2965_v36 }
 0x14e   : > { %1334 = vmatprep.subr.bf16.mxu0 %v860_v39 }
 0x14f   : > { %v852_v43 = vsel %vm842_vm1, %v2967_v41, %v2962_v25  ;;  %v851_v44 = vsel %vm842_vm1, %v2966_v42, %v2961_v26  ;;  %v854_v51 = vsel %vm842_vm1, %v2977_v34, %v2972_v19  ;;  %v853_v52 = vsel %vm842_vm1, %v2976_v38, %v2971_v20  ;;  %v3067_v26 = vld [vmem:[%s4194_s6] sm:$0xff]  }
 0x150   : > { %v2995_v45 = vpop.permute.xlu1 %2994  ;;  %v859_v48 = vpack.c.bf16 %v852_v43, %v851_v44  ;;  %v2980_v49 = vpop.permute.xlu0 %2979  ;;  %v861_v58 = vpack.c.bf16 %v854_v51, %v853_v52 }
 0x151   : > { %v2982_v53 = vunpack.i.h.bf16 %v2980_v49  ;;  %v2981_v54 = vunpack.i.l.bf16 %v2980_v49  ;;  %v2997_v6 = vunpack.i.h.bf16 %v2995_v45  ;;  %v2996_v7 = vunpack.i.l.bf16 %v2995_v45  ;;  %v3068_v45 = vld [vmem:[%s4194_s6 + $0x8] sm:$0xff]  }
 0x152   : > { %1335 = vmatpush1.bf16.msra.mxu0 %v859_v48 }
 0x153   : > { %1336 = vmatprep.subr.bf16.mxu0 %v862_v50  ;;  %v847_v56 = vsel %vm842_vm1, %v2981_v54, %v2956_v47  ;;  %v848_v57 = vsel %vm842_vm1, %v2982_v53, %v2957_v46 }
 0x154   : > { %v3000_v55 = vpop.permute.xlu1 %2999  ;;  %v2985_v59 = vpop.permute.xlu0 %2984  ;;  %v864_v60 = vpack.c.bf16 %v848_v57, %v847_v56 }
 0x155   : > { %v2987_v61 = vunpack.i.h.bf16 %v2985_v59  ;;  %v2986_v62 = vunpack.i.l.bf16 %v2985_v59  ;;  %v3002_v1 = vunpack.i.h.bf16 %v3000_v55  ;;  %v3001_v2 = vunpack.i.l.bf16 %v3000_v55 }
 0x156   : > { %1337 = vmatpush1.bf16.msra.mxu0 %v861_v58 }
 0x157   : > { %v855_v3 = vsel %vm842_vm1, %v2986_v62, %v2981_v54  ;;  %v856_v4 = vsel %vm842_vm1, %v2987_v61, %v2982_v53  ;;  %1338 = vmatprep.subr.bf16.mxu0 %v864_v60  ;;  %v857_v13 = vsel %vm842_vm1, %v3001_v2, %v2996_v7  ;;  %v858_v14 = vsel %vm842_vm1, %v3002_v1, %v2997_v6 }
 0x158   : > { %v3010_v5 = vpop.permute.xlu1 %3009  ;;  %v863_v8 = vpack.c.bf16 %v856_v4, %v855_v3  ;;  %v2990_v10 = vpop.permute.xlu0 %2989  ;;  %v865_v25 = vpack.c.bf16 %v858_v14, %v857_v13 }
 0x159   : > { %v2992_v11 = vunpack.i.h.bf16 %v2990_v10  ;;  %v2991_v12 = vunpack.i.l.bf16 %v2990_v10  ;;  %v3012_v39 = vunpack.i.h.bf16 %v3010_v5  ;;  %v3011_v40 = vunpack.i.l.bf16 %v3010_v5 }
 0x15a   : > { %1339 = vmatpush1.bf16.msra.mxu0 %v863_v8 }
 0x15b   : > { %v849_v19 = vsel %vm842_vm1, %v2996_v7, %v2991_v12  ;;  %v850_v20 = vsel %vm842_vm1, %v2997_v6, %v2992_v11  ;;  %v3072_v11 = vld [vmem:[%s4194_s6 + $0x10] sm:$0xff]  }
 0x15c   : > { %v3025_v17 = vpop.permute.xlu1 %3024  ;;  %v3005_v21 = vpop.permute.xlu0 %3004  ;;  %v866_v23 = vpack.c.bf16 %v850_v20, %v849_v19 }
 0x15d   : > { %v3007_v32 = vunpack.i.h.bf16 %v3005_v21  ;;  %v3006_v33 = vunpack.i.l.bf16 %v3005_v21  ;;  %v3027_v37 = vunpack.i.h.bf16 %v3025_v17  ;;  %v3026_v34 = vunpack.i.l.bf16 %v3025_v17 }
 0x15e   : > { %1340 = vmatprep.subr.bf16.mxu0 %v866_v23 }
 0x15f   : > { %1341 = vmatpush1.bf16.msra.mxu0 %v865_v25 }
 0x160   : > { %v3030_v27 = vpop.permute.xlu1 %3029  ;;  %v3015_v31 = vpop.permute.xlu0 %3014  ;;  %1572 = vmatprep.subr.bf16.mxu0 %v3071_v24 }
 0x161   : > { %v3032_v41 = vunpack.i.h.bf16 %v3030_v27  ;;  %v3031_v42 = vunpack.i.l.bf16 %v3030_v27  ;;  %v3017_v61 = vunpack.i.h.bf16 %v3015_v31  ;;  %v3016_v62 = vunpack.i.l.bf16 %v3015_v31 }
 0x162   : > { %2649 = vmatmul.mubr.msk.bf16.vlgmr.msra.gmra.mrb[0].mxu0 %vm939_vm0, %v3067_v26 }
 0x163   : > { %1376 = vmatprep.mubr.bf16.mxu0 %v3346_v18  ;;  %1573 = vmatpush1.bf16.msra.mxu0 %v3069_v30  ;;  %v780_v56 = vsel %vm769_vm2, %v3011_v40, %v3031_v42  ;;  %v781_v57 = vsel %vm769_vm2, %v3012_v39, %v3032_v41  ;;  %v3073_v39 = vld [vmem:[%s4192_s4] sm:$0xff]   ;;  %v3074_v40 = vld [vmem:[%s4194_s6 + $0x18] sm:$0xff]  }
 0x164   : > { %v3045_v36 = vpop.permute.xlu1 %3044  ;;  %v3020_v38 = vpop.permute.xlu0 %3019  ;;  %v788_v3 = vpack.c.bf16 %v781_v57, %v780_v56 }
 0x165   : > { %v3022_v43 = vunpack.i.h.bf16 %v3020_v38  ;;  %v3021_v44 = vunpack.i.l.bf16 %v3020_v38  ;;  %v3047_v4 = vunpack.i.h.bf16 %v3045_v36  ;;  %v3046_v5 = vunpack.i.l.bf16 %v3045_v36  ;;  %v3086_v38 = vld [vmem:[%s4195_s7 + $0x8] sm:$0xff]  }
 0x167   : > { %v770_v47 = vsel %vm769_vm2, %v3021_v44, %v3026_v34  ;;  %v771_v48 = vsel %vm769_vm2, %v3022_v43, %v3027_v37  ;;  %v778_v49 = vsel %vm769_vm2, %v3006_v33, %v3021_v44  ;;  %v779_v50 = vsel %vm769_vm2, %v3007_v32, %v3022_v43  ;;  %v3084_v37 = vld [vmem:[%s4195_s7] sm:$0xff]   ;;  %v3085_v34 = vld [vmem:[%s4192_s4 + $0x30] sm:$0xff]   ;;  %v3090_v44 = vld [vmem:[%s4195_s7 + $0x18] sm:$0xff]  }
 0x168   : > { %v3050_v46 = vpop.permute.xlu1 %3049  ;;  %v3035_v51 = vpop.permute.xlu0 %3034  ;;  %v787_v52 = vpack.c.bf16 %v771_v48, %v770_v47  ;;  %v786_v53 = vpack.c.bf16 %v779_v50, %v778_v49  ;;  %v3089_v43 = vld [vmem:[%s4193_s5 + $0x20] sm:$0xff]   ;;  %v3093_v47 = vld [vmem:[%s4193_s5 + $0x30] sm:$0xff]   ;;  %v3094_v48 = vld [vmem:[%s4195_s7 + $0x28] sm:$0xff]  }
 0x169   : > { %v3037_v54 = vunpack.i.h.bf16 %v3035_v51  ;;  %v3036_v55 = vunpack.i.l.bf16 %v3035_v51  ;;  %v3052_v19 = vunpack.i.h.bf16 %v3050_v46  ;;  %v3051_v20 = vunpack.i.l.bf16 %v3050_v46  ;;  %v3092_v46 = vld [vmem:[%s4195_s7 + $0x20] sm:$0xff]   ;;  %v3095_v49 = vld [vmem:[%s4193_s5 + $0x38] sm:$0xff]   ;;  %v3096_v50 = vld [vmem:[%s4195_s7 + $0x30] sm:$0xff]  }
 0x16a   : > { %964 = vmatprep.subr.bf16.mxu1 %v787_v52  ;;  %2650 = vmatmul.mubr.msk.bf16.gmra.mrb[4].mxu0 %vm939_vm0, %v3068_v45  ;;  %v3091_v45 = vld [vmem:[%s4193_s5 + $0x28] sm:$0xff]   ;;  %v3097_v51 = vld [vmem:[%s4195_s7 + $0x38] sm:$0xff]  }
 0x16b   : > { %965 = vmatpush1.bf16.msra.mxu1 %v786_v53  ;;  %v772_v59 = vsel %vm769_vm2, %v3031_v42, %v3036_v55  ;;  %v773_v60 = vsel %vm769_vm2, %v3032_v41, %v3037_v54  ;;  %1386 = vmatprep.mubr.bf16.mxu0 %v3346_v18  ;;  %v3087_v41 = vld [vmem:[%s4192_s4 + $0x38] sm:$0xff]   ;;  %v3088_v42 = vld [vmem:[%s4195_s7 + $0x10] sm:$0xff]  }
 0x16c   : > { %v3060_v58 = vpop.permute.xlu1 %3059  ;;  %v3040_v1 = vpop.permute.xlu0 %3039  ;;  %v789_v2 = vpack.c.bf16 %v773_v60, %v772_v59 }
 0x16d   : > { %v3042_v6 = vunpack.i.h.bf16 %v3040_v1  ;;  %v3041_v7 = vunpack.i.l.bf16 %v3040_v1  ;;  %v3062_v8 = vunpack.i.h.bf16 %v3060_v58  ;;  %v3061_v10 = vunpack.i.l.bf16 %v3060_v58 }
 0x16e   : > { %966 = vmatprep.subr.bf16.mxu1 %v789_v2 }
 0x16f   : > { %967 = vmatpush1.bf16.msra.mxu1 %v788_v3  ;;  %v774_v12 = vsel %vm769_vm2, %v3041_v7, %v3046_v5  ;;  %v775_v13 = vsel %vm769_vm2, %v3042_v6, %v3047_v4  ;;  %v782_v14 = vsel %vm769_vm2, %v3016_v62, %v3041_v7  ;;  %v783_v17 = vsel %vm769_vm2, %v3017_v61, %v3042_v6 }
 0x170   : > { %v3055_v21 = vpop.permute.xlu0 %3054  ;;  %v791_v23 = vpack.c.bf16 %v775_v13, %v774_v12  ;;  %v790_v24 = vpack.c.bf16 %v783_v17, %v782_v14  ;;  %v784_v27 = vsel %vm769_vm2, %v3061_v10, %v3051_v20  ;;  %v785_v30 = vsel %vm769_vm2, %v3062_v8, %v3052_v19 }
 0x171   : > { %v3057_v25 = vunpack.i.h.bf16 %v3055_v21  ;;  %v3056_v26 = vunpack.i.l.bf16 %v3055_v21  ;;  %v792_v36 = vpack.c.bf16 %v785_v30, %v784_v27 }
 0x172   : > { %968 = vmatprep.subr.bf16.mxu1 %v791_v23  ;;  %2651 = vmatmul.mubr.msk.bf16.gmra.mrb[8].mxu0 %vm939_vm0, %v3072_v11 }
 0x173   : > { %969 = vmatpush1.bf16.msra.mxu1 %v790_v24  ;;  %v776_v31 = vsel %vm769_vm2, %v3051_v20, %v3056_v26  ;;  %v777_v32 = vsel %vm769_vm2, %v3052_v19, %v3057_v25  ;;  %1396 = vmatprep.mubr.bf16.mxu0 %v3346_v18 }
 0x174   : > { %v793_v33 = vpack.c.bf16 %v777_v32, %v776_v31 }
 0x176   : > { %970 = vmatprep.subr.bf16.mxu1 %v793_v33 }
 0x177   : > { %971 = vmatpush1.bf16.msra.mxu1 %v792_v36 }
 0x178   : > { %2753 = vmatprep.subr.bf16.mxu1 %v3583_v63  ;;  %v3076_v63 = vld [vmem:[%s4194_s6 + $0x20] sm:$0xff]  }
 0x17a   : > { %2617 = vmatmul.mubr.msk.bf16.vlgmr.msra.gmra.mrb[0].mxu1 %vm939_vm0, %v3073_v39  ;;  %2652 = vmatmul.mubr.msk.bf16.gmra.mrb[12].mxu0 %vm939_vm0, %v3074_v40 }
 0x17b   : > { %2757 = vmatpush1.bf16.msra.mxu1 %v3585_v0  ;;  %1006 = vmatprep.mubr.bf16.mxu1 %v3346_v18  ;;  %v3077_v0 = vld [vmem:[%s4192_s4 + $0x10] sm:$0xff]  }
 0x17c   : > { %2754 = vmatprep.subr.bf16.mxu1 %v3595_v9  ;;  %1406 = vmatprep.mubr.bf16.mxu0 %v3346_v18  ;;  %v3078_v9 = vld [vmem:[%s4194_s6 + $0x28] sm:$0xff]  }
 0x17d   : > { %v1741_v19 = vpop.permute.xlu1 %1740 }
 0x17f   : > { %2758 = vmatpush1.bf16.msra.mxu1 %v3601_v16  ;;  %v3079_v16 = vld [vmem:[%s4192_s4 + $0x18] sm:$0xff]  }
 0x180   : > { %2755 = vmatprep.subr.bf16.mxu1 %v3605_v22  ;;  %v3080_v22 = vld [vmem:[%s4194_s6 + $0x30] sm:$0xff]  }
 0x181   : > { %v1736_v10 = vpop.permute.xlu0 %1735 }
 0x182   : > { %2618 = vmatmul.mubr.msk.bf16.gmra.mrb[4].mxu1 %vm939_vm0, %v3075_v15  ;;  %2653 = vmatmul.mubr.msk.bf16.gmra.mrb[16].mxu0 %vm939_vm0, %v3076_v63 }
 0x183   : > { %2759 = vmatpush1.bf16.msra.mxu1 %v3611_v28  ;;  %1016 = vmatprep.mubr.bf16.mxu1 %v3346_v18  ;;  %v3081_v28 = vld [vmem:[%s4192_s4 + $0x20] sm:$0xff]  }
 0x184   : > { %2756 = vmatprep.subr.bf16.mxu1 %v3614_v29  ;;  %1416 = vmatprep.mubr.bf16.mxu0 %v3346_v18  ;;  %v3082_v29 = vld [vmem:[%s4194_s6 + $0x38] sm:$0xff]  }
 0x185   : > { %v1746_v33 = vpop.permute.xlu0 %1745 }
 0x187   : > { %2760 = vmatpush1.bf16.msra.mxu1 %v3619_v35  ;;  %v3083_v35 = vld [vmem:[%s4192_s4 + $0x28] sm:$0xff]  }
 0x18a   : > { %2619 = vmatmul.mubr.msk.bf16.gmra.mrb[8].mxu1 %vm939_vm0, %v3077_v0  ;;  %2654 = vmatmul.mubr.msk.bf16.gmra.mrb[20].mxu0 %vm939_vm0, %v3078_v9  ;;  %v1751_v9 = vpop.permute.xlu1 %1750 }
 0x18b   : > { %1026 = vmatprep.mubr.bf16.mxu1 %v3346_v18  ;;  %1426 = vmatprep.mubr.bf16.mxu0 %v3346_v18 }
 0x192   : > { %2620 = vmatmul.mubr.msk.bf16.gmra.mrb[12].mxu1 %vm939_vm0, %v3079_v16  ;;  %2655 = vmatmul.mubr.msk.bf16.gmra.mrb[24].mxu0 %vm939_vm0, %v3080_v22 }
 0x193   : > { %1036 = vmatprep.mubr.bf16.mxu1 %v3346_v18  ;;  %1436 = vmatprep.mubr.bf16.mxu0 %v3346_v18 }
 0x19a   : > { %2621 = vmatmul.mubr.msk.bf16.gmra.mrb[16].mxu1 %vm939_vm0, %v3081_v28  ;;  %2656 = vmatmul.mubr.msk.bf16.gmra.mrb[28].mxu0 %vm939_vm0, %v3082_v29 }
 0x19b   : > { %1046 = vmatprep.mubr.bf16.mxu1 %v3346_v18  ;;  %1604 = vmatprep.mubr.bf16.mxu0 %v3346_v18 }
 0x1a2   : > { %2622 = vmatmul.mubr.msk.bf16.gmra.mrb[20].mxu1 %vm939_vm0, %v3083_v35  ;;  %2667 = vmatmul.mubr.msk.bf16.vlgmr.msra.gmra.mrb[0].mxu0 %vm1547_vm3, %v3084_v37 }
 0x1a3   : > { %1056 = vmatprep.mubr.bf16.mxu1 %v3346_v18  ;;  %1614 = vmatprep.mubr.bf16.mxu0 %v3346_v18 }
 0x1aa   : > { %2623 = vmatmul.mubr.msk.bf16.gmra.mrb[24].mxu1 %vm939_vm0, %v3085_v34  ;;  %2668 = vmatmul.mubr.msk.bf16.gmra.mrb[4].mxu0 %vm1547_vm3, %v3086_v38 }
 0x1ab   : > { %1066 = vmatprep.mubr.bf16.mxu1 %v3346_v18  ;;  %1624 = vmatprep.mubr.bf16.mxu0 %v3346_v18 }
 0x1b2   : > { %2624 = vmatmul.mubr.msk.bf16.gmra.mrb[28].mxu1 %vm939_vm0, %v3087_v41  ;;  %2669 = vmatmul.mubr.msk.bf16.gmra.mrb[8].mxu0 %vm1547_vm3, %v3088_v42  ;;  %v1756_v42 = vpop.permute.xlu0 %1755 }
 0x1b3   : > { %1213 = vmatprep.mubr.bf16.mxu1 %v3346_v18  ;;  %1634 = vmatprep.mubr.bf16.mxu0 %v3346_v18 }
 0x1ba   : > { %2637 = vmatmul.mubr.msk.bf16.vlgmr.msra.gmra.mrb[16].mxu1 %vm939_vm0, %v3089_v43  ;;  %2670 = vmatmul.mubr.msk.bf16.gmra.mrb[12].mxu0 %vm1547_vm3, %v3090_v44 }
 0x1bb   : > { %1223 = vmatprep.mubr.bf16.mxu1 %v3346_v18  ;;  %1644 = vmatprep.mubr.bf16.mxu0 %v3346_v18 }
 0x1c2   : > { %2638 = vmatmul.mubr.msk.bf16.gmra.mrb[20].mxu1 %vm939_vm0, %v3091_v45  ;;  %2671 = vmatmul.mubr.msk.bf16.gmra.mrb[16].mxu0 %vm1547_vm3, %v3092_v46 }
 0x1c3   : > { %1233 = vmatprep.mubr.bf16.mxu1 %v3346_v18  ;;  %1654 = vmatprep.mubr.bf16.mxu0 %v3346_v18 }
 0x1ca   : > { %2639 = vmatmul.mubr.msk.bf16.gmra.mrb[24].mxu1 %vm939_vm0, %v3093_v47  ;;  %2672 = vmatmul.mubr.msk.bf16.gmra.mrb[20].mxu0 %vm1547_vm3, %v3094_v48 }
 0x1cb   : > { %1243 = vmatprep.mubr.bf16.mxu1 %v3346_v18  ;;  %1664 = vmatprep.mubr.bf16.mxu0 %v3346_v18 }
 0x1d2   : > { %2640 = vmatmul.mubr.msk.bf16.gmra.mrb[28].mxu1 %vm939_vm0, %v3095_v49  ;;  %2673 = vmatmul.mubr.msk.bf16.gmra.mrb[24].mxu0 %vm1547_vm3, %v3096_v50 }
 0x1d3   : > { %1674 = vmatprep.mubr.bf16.mxu0 %v3346_v18  ;;  %2189 = vmatprep.mubr.bf16.mxu1 %v3346_v18 }
 0x1da   : > { %2674 = vmatmul.mubr.msk.bf16.gmra.mrb[28].mxu0 %vm1547_vm3, %v3097_v51 }
 0x24d   : > { %v998_v52 = vpop.f32.mrb[0].mxu1 }
 0x24e   : > { %v1000_v53 = vpop.f32.mrb[1].mxu1 }
 0x24f   : > { %v1002_v54 = vpop.f32.mrb[2].mxu1 }
 0x250   : > { %v1004_v55 = vpop.f32.mrb[3].mxu1 }
 0x255   : > { %v1008_v56 = vpop.f32.mrb[4].mxu1 }
 0x256   : > { %v1010_v57 = vpop.f32.mrb[5].mxu1 }
 0x257   : > { %v1012_v58 = vpop.f32.mrb[6].mxu1 }
 0x258   : > { %v1014_v59 = vpop.f32.mrb[7].mxu1 }
 0x25d   : > { %v1018_v60 = vpop.f32.mrb[8].mxu1 }
 0x25e   : > { %v1020_v61 = vpop.f32.mrb[9].mxu1 }
 0x25f   : > { %v1022_v62 = vpop.f32.mrb[10].mxu1 }
 0x260   : > { %v1024_v1 = vpop.f32.mrb[11].mxu1 }
 0x265   : > { %v3964_v2 = vpop.f32.mrb[12].mxu1 }
 0x266   : > { %v3966_v3 = vpop.f32.mrb[13].mxu1 }
 0x267   : > { %v3968_v4 = vpop.f32.mrb[14].mxu1 }
 0x268   : > { %v3970_v5 = vpop.f32.mrb[15].mxu1 }
 0x275   : > { %v1606_v6 = vpop.f32.mrb[0].mxu0 }
 0x276   : > { %v2761_v7 = vadd.f32 %v1606_v6, %v998_v52  ;;  %v1608_v8 = vpop.f32.mrb[1].mxu0 }
 0x277   : > { %v2762_v11 = vadd.f32 %v1608_v8, %v1000_v53  ;;  %v1610_v12 = vpop.f32.mrb[2].mxu0 }
 0x278   : > { %v1813_v13 = vadd.f32 %v2761_v7, %v1736_v10  ;;  %v2763_v14 = vadd.f32 %v1610_v12, %v1002_v54  ;;  %v1612_v17 = vpop.f32.mrb[3].mxu0  ;;  %v1761_v54 = vpop.permute.xlu1 %1760 }
 0x279   : > { %v1814_v20 = vadd.f32 %v2762_v11, %v1736_v10  ;;  %v2764_v21 = vadd.f32 %v1612_v17, %v1004_v55 }
 0x27a   : > { %v2675_v23 = vmul.f32 -1.442695, %v1813_v13  ;;  %v1815_v24 = vadd.f32 %v2763_v14, %v1741_v19 }
 0x27b   : > { %v2676_v25 = vmul.f32 -1.442695, %v1814_v20  ;;  %v1816_v27 = vadd.f32 %v2764_v21, %v1741_v19 }
 0x27c   : > { %v2677_v26 = vmul.f32 -1.442695, %v1815_v24  ;;  %3106 = vpow2.f32 %v2675_v23 }
 0x27d   : > { %v1616_v30 = vpop.f32.mrb[4].mxu0  ;;  %3108 = vpow2.f32 %v2676_v25  ;;  %v2678_v40 = vmul.f32 -1.442695, %v1816_v27 }
 0x27e   : > { %v2765_v31 = vadd.f32 %v1616_v30, %v1008_v56  ;;  %v1618_v32 = vpop.f32.mrb[5].mxu0  ;;  %3110 = vpow2.f32 %v2677_v26 }
 0x27f   : > { %v2766_v36 = vadd.f32 %v1618_v32, %v1010_v57  ;;  %v1620_v39 = vpop.f32.mrb[6].mxu0  ;;  %3112 = vpow2.f32 %v2678_v40 }
 0x280   : > { %v1817_v15 = vadd.f32 %v2765_v31, %v1746_v33  ;;  %v2767_v63 = vadd.f32 %v1620_v39, %v1012_v58  ;;  %v1622_v0 = vpop.f32.mrb[7].mxu0 }
 0x281   : > { %v1818_v16 = vadd.f32 %v2766_v36, %v1746_v33  ;;  %v2768_v22 = vadd.f32 %v1622_v0, %v1014_v59  ;;  %v1766_v59 = vpop.permute.xlu0 %1765  ;;  %v1771_v36 = vpop.permute.xlu1 %1770 }
 0x282   : > { %v2679_v28 = vmul.f32 -1.442695, %v1817_v15  ;;  %v1819_v29 = vadd.f32 %v2767_v63, %v1751_v9 }
 0x283   : > { %v2680_v35 = vmul.f32 -1.442695, %v1818_v16  ;;  %v1820_v37 = vadd.f32 %v2768_v22, %v1751_v9 }
 0x284   : > { %v2681_v34 = vmul.f32 -1.442695, %v1819_v29  ;;  %3114 = vpow2.f32 %v2679_v28 }
 0x285   : > { %v2682_v38 = vmul.f32 -1.442695, %v1820_v37  ;;  %v1626_v41 = vpop.f32.mrb[8].mxu0  ;;  %3116 = vpow2.f32 %v2680_v35  ;;  %v1776_v40 = vpop.permute.xlu0 %1775 }
 0x286   : > { %v2769_v43 = vadd.f32 %v1626_v41, %v1018_v60  ;;  %v1628_v44 = vpop.f32.mrb[9].mxu0  ;;  %v3107_v45 = vpop.eup %3106  ;;  %3118 = vpow2.f32 %v2681_v34 }
 0x287   : > { %v2770_v46 = vadd.f32 %v1628_v44, %v1020_v61  ;;  %v1630_v47 = vpop.f32.mrb[10].mxu0  ;;  %v3109_v48 = vpop.eup %3108  ;;  %3120 = vpow2.f32 %v2682_v38  ;;  %v1893_v55 = vadd.f32 1.0, %v3107_v45 }
 0x288   : > { %v2771_v49 = vadd.f32 %v1630_v47, %v1022_v62  ;;  %v1632_v50 = vpop.f32.mrb[11].mxu0  ;;  %v3111_v51 = vpop.eup %3110  ;;  %v1821_v52 = vadd.f32 %v2769_v43, %v1756_v42  ;;  %v1894_v57 = vadd.f32 1.0, %v3109_v48 }
 0x289   : > { %v2772_v53 = vadd.f32 %v1632_v50, %v1024_v1  ;;  %v1822_v56 = vadd.f32 %v2770_v46, %v1756_v42  ;;  %v1895_v6 = vadd.f32 1.0, %v3111_v51  ;;  %v3113_v61 = vpop.eup %3112  ;;  %3122 = vrcp.f32 %v1893_v55  ;;  %v1786_v55 = vpop.permute.xlu0 %1785 }
 0x28a   : > { %v1823_v58 = vadd.f32 %v2771_v49, %v1761_v54  ;;  %v2683_v7 = vmul.f32 -1.442695, %v1821_v52  ;;  %3124 = vrcp.f32 %v1894_v57  ;;  %v1896_v30 = vadd.f32 1.0, %v3113_v61  ;;  %v1781_v52 = vpop.permute.xlu1 %1780 }
 0x28b   : > { %v1824_v60 = vadd.f32 %v2772_v53, %v1761_v54  ;;  %v2684_v11 = vmul.f32 -1.442695, %v1822_v56  ;;  %3126 = vrcp.f32 %v1895_v6 }
 0x28c   : > { %v2685_v1 = vmul.f32 -1.442695, %v1823_v58  ;;  %3128 = vpow2.f32 %v2683_v7 }
 0x28d   : > { %v1215_v8 = vpop.f32.mrb[16].mxu1  ;;  %v1636_v10 = vpop.f32.mrb[12].mxu0  ;;  %v2686_v23 = vmul.f32 -1.442695, %v1824_v60  ;;  %3130 = vpow2.f32 %v2684_v11 }
 0x28e   : > { %v2773_v62 = vadd.f32 %v1636_v10, %v3964_v2  ;;  %v1217_v12 = vpop.f32.mrb[17].mxu1  ;;  %v1638_v13 = vpop.f32.mrb[13].mxu0  ;;  %3132 = vpow2.f32 %v2685_v1 }
 0x28f   : > { %v3115_v14 = vpop.eup %3114  ;;  %v2774_v17 = vadd.f32 %v1638_v13, %v3966_v3  ;;  %v1219_v19 = vpop.f32.mrb[18].mxu1  ;;  %3134 = vpow2.f32 %v2686_v23 }
 0x290   : > { %v1640_v20 = vpop.f32.mrb[14].mxu0  ;;  %v3117_v21 = vpop.eup %3116  ;;  %v1897_v32 = vadd.f32 1.0, %v3115_v14  ;;  %v1825_v33 = vadd.f32 %v2773_v62, %v1766_v59  ;;  %3136 = vrcp.f32 %v1896_v30 }
 0x291   : > { %v2775_v24 = vadd.f32 %v1640_v20, %v3968_v4  ;;  %v1221_v25 = vpop.f32.mrb[19].mxu1  ;;  %v1642_v26 = vpop.f32.mrb[15].mxu0  ;;  %v1898_v3 = vadd.f32 1.0, %v3117_v21  ;;  %v1826_v39 = vadd.f32 %v2774_v17, %v1766_v59 }
 0x292   : > { %v3119_v27 = vpop.eup %3118  ;;  %v2776_v2 = vadd.f32 %v1642_v26, %v3970_v5  ;;  %3138 = vrcp.f32 %v1897_v32  ;;  %v2687_v22 = vmul.f32 -1.442695, %v1825_v33  ;;  %v1796_v33 = vpop.permute.xlu0 %1795 }
 0x293   : > { %v3121_v31 = vpop.eup %3120  ;;  %v1899_v15 = vadd.f32 1.0, %v3119_v27  ;;  %v1827_v63 = vadd.f32 %v2775_v24, %v1771_v36  ;;  %3140 = vrcp.f32 %v1898_v3  ;;  %v2688_v35 = vmul.f32 -1.442695, %v1826_v39 }
 0x294   : > { %v1900_v4 = vadd.f32 1.0, %v3121_v31  ;;  %v1828_v0 = vadd.f32 %v2776_v2, %v1771_v36  ;;  %v3976_v41 = vpop.eup %3122  ;;  %v1791_v2 = vpop.permute.xlu1 %1790 }
 0x295   : > { %v1225_v9 = vpop.f32.mrb[20].mxu1  ;;  %v1646_v16 = vpop.f32.mrb[16].mxu0  ;;  %3142 = vrcp.f32 %v1899_v15  ;;  %v2689_v42 = vmul.f32 -1.442695, %v1827_v63 }
 0x296   : > { %v2777_v5 = vadd.f32 %v1646_v16, %v1215_v8  ;;  %v1227_v28 = vpop.f32.mrb[21].mxu1  ;;  %v1648_v29 = vpop.f32.mrb[17].mxu0  ;;  %3144 = vrcp.f32 %v1900_v4  ;;  %v2690_v47 = vmul.f32 -1.442695, %v1828_v0 }
 0x297   : > { %v2778_v37 = vadd.f32 %v1648_v29, %v1217_v12  ;;  %v1229_v34 = vpop.f32.mrb[22].mxu1  ;;  %v1650_v38 = vpop.f32.mrb[18].mxu0  ;;  %3146 = vpow2.f32 %v2687_v22 }
 0x298   : > { %v2779_v43 = vadd.f32 %v1650_v38, %v1219_v19  ;;  %v1231_v44 = vpop.f32.mrb[23].mxu1  ;;  %v1652_v45 = vpop.f32.mrb[19].mxu0  ;;  %v1829_v50 = vadd.f32 %v2777_v5, %v1776_v40  ;;  %3148 = vpow2.f32 %v2688_v35 }
 0x299   : > { %v3978_v46 = vpop.eup %3124  ;;  %v2780_v48 = vadd.f32 %v1652_v45, %v1221_v25  ;;  %v1830_v53 = vadd.f32 %v2778_v37, %v1776_v40  ;;  %3150 = vpow2.f32 %v2689_v42 }
 0x29a   : > { %v3980_v49 = vpop.eup %3126  ;;  %v1831_v56 = vadd.f32 %v2779_v43, %v1781_v52  ;;  %3152 = vpow2.f32 %v2690_v47  ;;  %v1801_v43 = vpop.permute.xlu1 %1800 }
 0x29b   : > { %v3129_v51 = vpop.eup %3128  ;;  %v1832_v58 = vadd.f32 %v2780_v48, %v1781_v52  ;;  %3154 = vtanh.f32 %v1829_v50 }
 0x29c   : > { %v3131_v54 = vpop.eup %3130  ;;  %v1901_v7 = vadd.f32 1.0, %v3129_v51  ;;  %3156 = vtanh.f32 %v1830_v53 }
 0x29d   : > { %v3133_v57 = vpop.eup %3132  ;;  %v1235_v59 = vpop.f32.mrb[24].mxu1  ;;  %v1902_v62 = vadd.f32 1.0, %v3131_v54  ;;  %3158 = vtanh.f32 %v1831_v56 }
 0x29e   : > { %v1656_v6 = vpop.f32.mrb[20].mxu0  ;;  %v3135_v60 = vpop.eup %3134  ;;  %v1903_v17 = vadd.f32 1.0, %v3133_v57  ;;  %3160 = vtanh.f32 %v1832_v58 }
 0x29f   : > { %v2781_v8 = vadd.f32 %v1656_v6, %v1225_v9  ;;  %v1237_v10 = vpop.f32.mrb[25].mxu1  ;;  %v1658_v61 = vpop.f32.mrb[21].mxu0  ;;  %v1904_v24 = vadd.f32 1.0, %v3135_v60  ;;  %3162 = vrcp.f32 %v1901_v7 }
 0x2a0   : > { %v3982_v11 = vpop.eup %3136  ;;  %v2782_v12 = vadd.f32 %v1658_v61, %v1227_v28  ;;  %v1239_v13 = vpop.f32.mrb[26].mxu1  ;;  %3164 = vrcp.f32 %v1902_v62 }
 0x2a1   : > { %v1660_v14 = vpop.f32.mrb[22].mxu0  ;;  %v3984_v1 = vpop.eup %3138  ;;  %v1833_v27 = vadd.f32 %v2781_v8, %v1786_v55  ;;  %3166 = vrcp.f32 %v1903_v17 }
 0x2a2   : > { %v2783_v19 = vadd.f32 %v1660_v14, %v1229_v34  ;;  %v1241_v20 = vpop.f32.mrb[27].mxu1  ;;  %v1662_v21 = vpop.f32.mrb[23].mxu0  ;;  %v1834_v31 = vadd.f32 %v2782_v12, %v1786_v55  ;;  %3168 = vrcp.f32 %v1904_v24 }
 0x2a3   : > { %v3986_v23 = vpop.eup %3140  ;;  %v2784_v25 = vadd.f32 %v1662_v21, %v1231_v44  ;;  %3170 = vtanh.f32 %v1833_v27  ;;  %v1806_v12 = vpop.permute.xlu0 %1805 }
 0x2a4   : > { %v3988_v26 = vpop.eup %3142  ;;  %v1835_v36 = vadd.f32 %v2783_v19, %v1791_v2  ;;  %3172 = vtanh.f32 %v1834_v31  ;;  %v1811_v21 = vpop.permute.xlu1 %1810 }
 0x2a5   : > { %v3990_v30 = vpop.eup %3144  ;;  %v1836_v39 = vadd.f32 %v2784_v25, %v1791_v2  ;;  %v1245_v40 = vpop.f32.mrb[28].mxu1 }
 0x2a6   : > { %v3147_v32 = vpop.eup %3146  ;;  %v1666_v15 = vpop.f32.mrb[24].mxu0  ;;  %3174 = vtanh.f32 %v1835_v36 }
 0x2a7   : > { %v3149_v3 = vpop.eup %3148  ;;  %v2785_v4 = vadd.f32 %v1666_v15, %v1235_v59  ;;  %v1247_v0 = vpop.f32.mrb[29].mxu1  ;;  %3176 = vtanh.f32 %v1836_v39  ;;  %v1905_v50 = vadd.f32 1.0, %v3147_v32 }
 0x2a8   : > { %v3151_v63 = vpop.eup %3150  ;;  %v1668_v9 = vpop.f32.mrb[25].mxu0  ;;  %v1906_v54 = vadd.f32 1.0, %v3149_v3 }
 0x2a9   : > { %v3153_v16 = vpop.eup %3152  ;;  %v2786_v22 = vadd.f32 %v1668_v9, %v1237_v10  ;;  %v1249_v5 = vpop.f32.mrb[30].mxu1  ;;  %v1837_v35 = vadd.f32 %v2785_v4, %v1796_v33  ;;  %v1907_v58 = vadd.f32 1.0, %v3151_v63 }
 0x2aa   : > { %v1670_v28 = vpop.f32.mrb[26].mxu0  ;;  %v3155_v29 = vpop.eup %3154  ;;  %v1908_v60 = vadd.f32 1.0, %v3153_v16 }
 0x2ab   : > { %v2787_v37 = vadd.f32 %v1670_v28, %v1239_v13  ;;  %v1251_v34 = vpop.f32.mrb[31].mxu1  ;;  %v1672_v38 = vpop.f32.mrb[27].mxu0  ;;  %v1838_v44 = vadd.f32 %v2786_v22, %v1796_v33  ;;  %v1957_v47 = vmul.f32 %v3155_v29, %v3976_v41  ;;  %3178 = vtanh.f32 %v1837_v35 }
 0x2ac   : > { %v3157_v42 = vpop.eup %3156  ;;  %v2788_v45 = vadd.f32 %v1672_v38, %v1241_v20 }
 0x2ad   : > { %v3159_v48 = vpop.eup %3158  ;;  %v1839_v51 = vadd.f32 %v2787_v37, %v1801_v43  ;;  %v1958_v52 = vmul.f32 %v3157_v42, %v3978_v46  ;;  %3180 = vtanh.f32 %v1838_v44  ;;  %v1676_v41 = vpop.f32.mrb[28].mxu0 }
 0x2ae   : > { %v3161_v53 = vpop.eup %3160  ;;  %v1840_v55 = vadd.f32 %v2788_v45, %v1801_v43  ;;  %v1959_v56 = vmul.f32 %v3159_v48, %v3980_v49  ;;  %v2789_v46 = vadd.f32 %v1676_v41, %v1245_v40  ;;  %v1678_v61 = vpop.f32.mrb[29].mxu0 }
 0x2af   : > { %v3163_v57 = vpop.eup %3162  ;;  %3182 = vtanh.f32 %v1839_v51  ;;  %v1960_v59 = vmul.f32 %v3161_v53, %v3982_v11  ;;  %v2790_v13 = vadd.f32 %v1678_v61, %v1247_v0  ;;  %v1680_v49 = vpop.f32.mrb[30].mxu0  ;;  %v3098_v51 = vld [vmem:[%s4197_s9] sm:$0xff]   ;;  %v3100_v53 = vld [vmem:[%s4197_s9 + $0x10] sm:$0xff]  }
 0x2b0   : > { %v3165_v6 = vpop.eup %3164  ;;  %3184 = vtanh.f32 %v1840_v55  ;;  %v1989_v7 = vpack.c.bf16 %v1959_v56, %v1957_v47  ;;  %v1841_v17 = vadd.f32 %v2789_v46, %v1806_v12  ;;  %v2791_v11 = vadd.f32 %v1680_v49, %v1249_v5  ;;  %v1682_v19 = vpop.f32.mrb[31].mxu0  ;;  %v3102_v55 = vld [vmem:[%s4197_s9 + $0x20] sm:$0xff]   ;;  %v3103_v56 = vld [vmem:[%s4197_s9 + $0x28] sm:$0xff]  }
 0x2b1   : > { %v3167_v8 = vpop.eup %3166  ;;  %3186 = vrcp.f32 %v1905_v50  ;;  %v1990_v10 = vpack.c.bf16 %v1960_v59, %v1958_v52  ;;  %v1842_v24 = vadd.f32 %v2790_v13, %v1806_v12  ;;  %v2792_v25 = vadd.f32 %v1682_v19, %v1251_v34  ;;  %v3099_v52 = vld [vmem:[%s4197_s9 + $0x8] sm:$0xff]   ;;  %v2016_v59 = vpop.permute.xlu0 %2015  ;;  %v3202_v46 = vld [vmem:[%s3569_s14] sm:$0xff] }
 0x2b2   : > { %v3169_v62 = vpop.eup %3168  ;;  %3188 = vrcp.f32 %v1906_v54  ;;  %v1843_v31 = vadd.f32 %v2791_v11, %v1811_v21  ;;  %v3101_v54 = vld [vmem:[%s4197_s9 + $0x18] sm:$0xff]   ;;  %v3203_v12 = vld [vmem:[%s3569_s14 + $0x8] sm:$0xff] }
 0x2b3   : > { %v3171_v14 = vpop.eup %3170  ;;  %3190 = vrcp.f32 %v1907_v58  ;;  %2157 = vmatprep.subr.bf16.mxu1 %v1990_v10  ;;  %v1844_v36 = vadd.f32 %v2792_v25, %v1811_v21  ;;  %v3105_v58 = vld [vmem:[%s4197_s9 + $0x38] sm:$0xff]  }
 0x2b4   : > { %v3173_v20 = vpop.eup %3172  ;;  %3192 = vrcp.f32 %v1908_v60  ;;  %2158 = vmatpush1.bf16.msra.mxu1 %v1989_v7  ;;  %v1961_v27 = vmul.f32 %v3171_v14, %v3984_v1  ;;  %v2021_v7 = vpop.permute.xlu1 %2020 }
 0x2b5   : > { %v3175_v2 = vpop.eup %3174  ;;  %3194 = vtanh.f32 %v1841_v17  ;;  %v1962_v32 = vmul.f32 %v3173_v20, %v3986_v23  ;;  %v3204_v17 = vld [vmem:[%s3569_s14 + $0x10] sm:$0xff]  ;;  %v3205_v20 = vld [vmem:[%s3569_s14 + $0x18] sm:$0xff]  ;;  %v2026_v25 = vpop.permute.xlu0 %2025 }
 0x2b6   : > { %v3177_v33 = vpop.eup %3176  ;;  %3196 = vtanh.f32 %v1842_v24  ;;  %v1963_v3 = vmul.f32 %v3175_v2, %v3988_v26 }
 0x2b7   : > { %v3179_v39 = vpop.eup %3178  ;;  %3198 = vtanh.f32 %v1843_v31  ;;  %v1964_v40 = vmul.f32 %v3177_v33, %v3990_v30 }
 0x2b8   : > { %v3181_v15 = vpop.eup %3180  ;;  %3200 = vtanh.f32 %v1844_v36  ;;  %v1991_v63 = vpack.c.bf16 %v1963_v3, %v1961_v27  ;;  %v1965_v4 = vmul.f32 %v3179_v39, %v3163_v57  ;;  %v3104_v57 = vld [vmem:[%s4197_s9 + $0x30] sm:$0xff]   ;;  %v2031_v33 = vpop.permute.xlu1 %2030  ;;  %v3206_v39 = vld [vmem:[%s3569_s14 + $0x20] sm:$0xff] }
 0x2b9   : > { %v3183_v0 = vpop.eup %3182  ;;  %v1992_v1 = vpack.c.bf16 %v1964_v40, %v1962_v32  ;;  %v1966_v9 = vmul.f32 %v3181_v15, %v3165_v6 }
 0x2ba   : > { %v3185_v16 = vpop.eup %3184  ;;  %v1967_v22 = vmul.f32 %v3183_v0, %v3167_v8 }
 0x2bb   : > { %v3187_v5 = vpop.eup %3186  ;;  %2159 = vmatprep.subr.bf16.mxu1 %v1992_v1  ;;  %v1968_v23 = vmul.f32 %v3185_v16, %v3169_v62  ;;  %v3208_v16 = vld [vmem:[%s3569_s14 + $0x30] sm:$0xff] }
 0x2bc   : > { %v3189_v28 = vpop.eup %3188  ;;  %2160 = vmatpush1.bf16.msra.mxu1 %v1991_v63  ;;  %v1993_v29 = vpack.c.bf16 %v1967_v22, %v1965_v4  ;;  %v3207_v4 = vld [vmem:[%s3569_s14 + $0x28] sm:$0xff] }
 0x2bd   : > { %v3191_v26 = vpop.eup %3190  ;;  %v1994_v35 = vpack.c.bf16 %v1968_v23, %v1966_v9  ;;  %v3209_v23 = vld [vmem:[%s3569_s14 + $0x38] sm:$0xff] }
 0x2be   : > { %v3193_v37 = vpop.eup %3192 }
 0x2bf   : > { %v3195_v34 = vpop.eup %3194  ;;  %2161 = vmatprep.subr.bf16.mxu1 %v1994_v35 }
 0x2c0   : > { %v3197_v30 = vpop.eup %3196  ;;  %2162 = vmatpush1.bf16.msra.mxu1 %v1993_v29  ;;  %v1969_v38 = vmul.f32 %v3195_v34, %v3187_v5 }
 0x2c1   : > { %v3199_v42 = vpop.eup %3198  ;;  %v1970_v43 = vmul.f32 %v3197_v30, %v3189_v28 }
 0x2c2   : > { %v3201_v44 = vpop.eup %3200  ;;  %v1971_v45 = vmul.f32 %v3199_v42, %v3191_v26  ;;  %v2036_v26 = vpop.permute.xlu0 %2035 }
 0x2c3   : > { %v1972_v47 = vmul.f32 %v3201_v44, %v3193_v37  ;;  %v3210_v44 = vld [vmem:[%s3569_s14 + $0x40] sm:$0xff] }
 0x2c4   : > { %v1995_v48 = vpack.c.bf16 %v1971_v45, %v1969_v38  ;;  %v2041_v38 = vpop.permute.xlu1 %2040 }
 0x2c5   : > { %v1996_v50 = vpack.c.bf16 %v1972_v47, %v1970_v43 }
 0x2c7   : > { %2163 = vmatprep.subr.bf16.mxu1 %v1996_v50  ;;  %v3211_v50 = vld [vmem:[%s3569_s14 + $0x48] sm:$0xff] }
 0x2c8   : > { %2164 = vmatpush1.bf16.msra.mxu1 %v1995_v48 }
 0x2cb   : > { %2699 = vmatmul.mubr.msk.bf16.vlgmr.msra.gmra.mrb[32].mxu1 %vm939_vm0, %v3098_v51 }
 0x2cc   : > { %2199 = vmatprep.mubr.bf16.mxu1 %v3346_v18 }
 0x2d3   : > { %2700 = vmatmul.mubr.msk.bf16.gmra.mrb[36].mxu1 %vm939_vm0, %v3099_v52 }
 0x2d4   : > { %2209 = vmatprep.mubr.bf16.mxu1 %v3346_v18 }
 0x2db   : > { %2701 = vmatmul.mubr.msk.bf16.gmra.mrb[40].mxu1 %vm939_vm0, %v3100_v53 }
 0x2dc   : > { %2219 = vmatprep.mubr.bf16.mxu1 %v3346_v18 }
 0x2e3   : > { %2702 = vmatmul.mubr.msk.bf16.gmra.mrb[44].mxu1 %vm939_vm0, %v3101_v54  ;;  %v3212_v54 = vld [vmem:[%s3569_s14 + $0x50] sm:$0xff] }
 0x2e4   : > { %2229 = vmatprep.mubr.bf16.mxu1 %v3346_v18 }
 0x2eb   : > { %2703 = vmatmul.mubr.msk.bf16.gmra.mrb[48].mxu1 %vm939_vm0, %v3102_v55 }
 0x2ec   : > { %2239 = vmatprep.mubr.bf16.mxu1 %v3346_v18 }
 0x2f3   : > { %2704 = vmatmul.mubr.msk.bf16.gmra.mrb[52].mxu1 %vm939_vm0, %v3103_v56 }
 0x2f4   : > { %2249 = vmatprep.mubr.bf16.mxu1 %v3346_v18 }
 0x2fb   : > { %2705 = vmatmul.mubr.msk.bf16.gmra.mrb[56].mxu1 %vm939_vm0, %v3104_v57  ;;  %v3213_v57 = vld [vmem:[%s3569_s14 + $0x58] sm:$0xff] }
 0x2fc   : > { %2259 = vmatprep.mubr.bf16.mxu1 %v3346_v18 }
 0x303   : > { %2706 = vmatmul.mubr.msk.bf16.gmra.mrb[60].mxu1 %vm939_vm0, %v3105_v58 }
 0x39e   : > { %v2191_v6 = vpop.f32.mrb[32].mxu1 }
 0x39f   : > { %v2192_v60 = vadd.f32 %v2191_v6, %v2016_v59  ;;  %v2193_v41 = vpop.f32.mrb[33].mxu1  ;;  %v2046_v6 = vpop.permute.xlu0 %2045 }
 0x3a0   : > { %v2194_v8 = vadd.f32 %v2193_v41, %v2016_v59  ;;  %v2195_v10 = vpop.f32.mrb[34].mxu1 }
 0x3a1   : > { %v2270_v61 = vadd.f32 %v3202_v46, %v2192_v60  ;;  %v2196_v62 = vadd.f32 %v2195_v10, %v2021_v7  ;;  %v2197_v18 = vpop.f32.mrb[35].mxu1  ;;  %v2051_v10 = vpop.permute.xlu1 %2050 }
 0x3a2   : > { %v2271_v13 = vadd.f32 %v3203_v12, %v2194_v8  ;;  %v2198_v49 = vadd.f32 %v2197_v18, %v2021_v7 }
 0x3a3   : > { %v2286_v14 = vmul.f32 0.70710677, %v2270_v61  ;;  %v2272_v11 = vadd.f32 %v3204_v17, %v2196_v62  ;;  %v3214_v62 = vld [vmem:[%s3569_s14 + $0x60] sm:$0xff] }
 0x3a4   : > { %v2287_v19 = vmul.f32 0.70710677, %v2271_v13  ;;  %v2273_v21 = vadd.f32 %v3205_v20, %v2198_v49  ;;  %v3215_v49 = vld [vmem:[%s3569_s14 + $0x68] sm:$0xff] }
 0x3a5   : > { %2302 = vst [vmem:[%s4045_s15] sm:$0xff] %v2286_v14  ;;  %v2288_v24 = vmul.f32 0.70710677, %v2272_v11 }
 0x3a6   : > { %2303 = vst [vmem:[%s4045_s15 + $0x8] sm:$0xff] %v2287_v19  ;;  %v2289_v27 = vmul.f32 0.70710677, %v2273_v21  ;;  %v2201_v2 = vpop.f32.mrb[36].mxu1  ;;  %v3216_v19 = vld [vmem:[%s3569_s14 + $0x70] sm:$0xff] }
 0x3a7   : > { %2304 = vst [vmem:[%s4045_s15 + $0x10] sm:$0xff] %v2288_v24  ;;  %v2202_v31 = vadd.f32 %v2201_v2, %v2026_v25  ;;  %v2203_v32 = vpop.f32.mrb[37].mxu1  ;;  %v3217_v24 = vld [vmem:[%s3569_s14 + $0x78] sm:$0xff]  ;;  %v2056_v2 = vpop.permute.xlu0 %2055  ;;  %s2375_s14 = scalar_lea.sflag [#allocation5], %s3564_s16 }
 0x3a8   : > { %2305 = vst [vmem:[%s4045_s15 + $0x18] sm:$0xff] %v2289_v27  ;;  %v2204_v36 = vadd.f32 %v2203_v32, %v2026_v25  ;;  %v2205_v3 = vpop.f32.mrb[38].mxu1 }
 0x3a9   : > { %v2274_v40 = vadd.f32 %v3206_v39, %v2202_v31  ;;  %v2206_v15 = vadd.f32 %v2205_v3, %v2031_v33  ;;  %v2207_v63 = vpop.f32.mrb[39].mxu1  ;;  %v2061_v3 = vpop.permute.xlu1 %2060 }
 0x3aa   : > { %v2275_v0 = vadd.f32 %v3207_v4, %v2204_v36  ;;  %v2208_v1 = vadd.f32 %v2207_v63, %v2031_v33 }
 0x3ab   : > { %v2290_v9 = vmul.f32 0.70710677, %v2274_v40  ;;  %v2276_v22 = vadd.f32 %v3208_v16, %v2206_v15 }
 0x3ac   : > { %v2291_v5 = vmul.f32 0.70710677, %v2275_v0  ;;  %v2277_v28 = vadd.f32 %v3209_v23, %v2208_v1 }
 0x3ad   : > { %2306 = vst [vmem:[%s4045_s15 + $0x20] sm:$0xff] %v2290_v9  ;;  %v2292_v29 = vmul.f32 0.70710677, %v2276_v22 }
 0x3ae   : > { %2307 = vst [vmem:[%s4045_s15 + $0x28] sm:$0xff] %v2291_v5  ;;  %v2293_v35 = vmul.f32 0.70710677, %v2277_v28  ;;  %v2211_v37 = vpop.f32.mrb[40].mxu1 }
 0x3af   : > { %2308 = vst [vmem:[%s4045_s15 + $0x30] sm:$0xff] %v2292_v29  ;;  %v2212_v34 = vadd.f32 %v2211_v37, %v2036_v26  ;;  %v2213_v30 = vpop.f32.mrb[41].mxu1 }
 0x3b0   : > { %2309 = vst [vmem:[%s4045_s15 + $0x38] sm:$0xff] %v2293_v35  ;;  %v2214_v42 = vadd.f32 %v2213_v30, %v2036_v26  ;;  %v2215_v43 = vpop.f32.mrb[42].mxu1 }
 0x3b1   : > { %v2278_v45 = vadd.f32 %v3210_v44, %v2212_v34  ;;  %v2216_v47 = vadd.f32 %v2215_v43, %v2041_v38  ;;  %v2217_v48 = vpop.f32.mrb[43].mxu1 }
 0x3b2   : > { %v2279_v51 = vadd.f32 %v3211_v50, %v2214_v42  ;;  %v2218_v52 = vadd.f32 %v2217_v48, %v2041_v38 }
 0x3b3   : > { %v2294_v53 = vmul.f32 0.70710677, %v2278_v45  ;;  %v2280_v55 = vadd.f32 %v3212_v54, %v2216_v47 }
 0x3b4   : > { %v2295_v56 = vmul.f32 0.70710677, %v2279_v51  ;;  %v2281_v58 = vadd.f32 %v3213_v57, %v2218_v52 }
 0x3b5   : > { %2310 = vst [vmem:[%s4045_s15 + $0x40] sm:$0xff] %v2294_v53  ;;  %v2296_v59 = vmul.f32 0.70710677, %v2280_v55 }
 0x3b6   : > { %2311 = vst [vmem:[%s4045_s15 + $0x48] sm:$0xff] %v2295_v56  ;;  %v2297_v60 = vmul.f32 0.70710677, %v2281_v58  ;;  %v2221_v41 = vpop.f32.mrb[44].mxu1 }
 0x3b7   : > { %2312 = vst [vmem:[%s4045_s15 + $0x50] sm:$0xff] %v2296_v59  ;;  %v2222_v7 = vadd.f32 %v2221_v41, %v2046_v6  ;;  %v2223_v8 = vpop.f32.mrb[45].mxu1 }
 0x3b8   : > { %2313 = vst [vmem:[%s4045_s15 + $0x58] sm:$0xff] %v2297_v60  ;;  %v2224_v46 = vadd.f32 %v2223_v8, %v2046_v6  ;;  %v2225_v61 = vpop.f32.mrb[46].mxu1 }
 0x3b9   : > { %v2282_v18 = vadd.f32 %v3214_v62, %v2222_v7  ;;  %v2226_v12 = vadd.f32 %v2225_v61, %v2051_v10  ;;  %v2227_v13 = vpop.f32.mrb[47].mxu1 }
 0x3ba   : > { %v2283_v14 = vadd.f32 %v3215_v49, %v2224_v46  ;;  %v2228_v17 = vadd.f32 %v2227_v13, %v2051_v10 }
 0x3bb   : > { %v2298_v11 = vmul.f32 0.70710677, %v2282_v18  ;;  %v2284_v20 = vadd.f32 %v3216_v19, %v2226_v12 }
 0x3bc   : > { %v2299_v21 = vmul.f32 0.70710677, %v2283_v14  ;;  %v2285_v25 = vadd.f32 %v3217_v24, %v2228_v17 }
 0x3bd   : > { %2314 = vst [vmem:[%s4045_s15 + $0x60] sm:$0xff] %v2298_v11  ;;  %v2300_v27 = vmul.f32 0.70710677, %v2284_v20 }
 0x3be   : > { %2315 = vst [vmem:[%s4045_s15 + $0x68] sm:$0xff] %v2299_v21  ;;  %v2301_v31 = vmul.f32 0.70710677, %v2285_v25  ;;  %v2231_v32 = vpop.f32.mrb[48].mxu1 }
 0x3bf   : > { %2316 = vst [vmem:[%s4045_s15 + $0x70] sm:$0xff] %v2300_v27  ;;  %v2232_v33 = vadd.f32 %v2231_v32, %v2056_v2  ;;  %v2233_v36 = vpop.f32.mrb[49].mxu1 }
 0x3c0   : > { %2317 = vst [vmem:[%s4045_s15 + $0x78] sm:$0xff] %v2301_v31  ;;  %v2234_v39 = vadd.f32 %v2233_v36, %v2056_v2  ;;  %v2235_v40 = vpop.f32.mrb[50].mxu1 }
 0x3c1   : > { %v2236_v15 = vadd.f32 %v2235_v40, %v2061_v3  ;;  %v2237_v63 = vpop.f32.mrb[51].mxu1 }
 0x3c2   : > { %3231 = shalt.err (!%p3228_p11)
}
 0x3c3   : > { %s3232_s15 = scalar_lea.hbm %s4084_s17, 2048  ;;  %s3236_s0 = scalar_lea.hbm %s4199_s11, 8192 }
 0x3c4   : > { %p3233_p12 = scmp.ne.s32.totalorder %s4084_s17, %s3232_s15  ;;  %p3237_p1 = scmp.lt.u32.totalorder %s4084_s17, %s4199_s11 }
 0x3c5   : > { %p3238_p2 = scmp.lt.u32.totalorder %s3236_s0, %s3232_s15  ;;  %p3240_p4 = scmp.lt.u32.totalorder %s3232_s15, %s4084_s17 }
 0x3c6   : > { %p3234_p13 = pnand %p3233_p12, %p3481_p8 }
 0x3c7   : > { %p3239_p3 = por %p3238_p2, %p3237_p1 }
 0x3c8   : > { %p3235_p0 = pneg %p3234_p13 }
 0x3c9   : > { %p3241_p5 = por %p3240_p4, %p3239_p3 }
 0x3cb   : > { %p3242_p6 = pnand %p3241_p5, %p3235_p0 }
 0x3cd   : > { %3245 = shalt.err (!%p3242_p6)
}
 0x3ce   : > { %s3350_s30 = smov 256   ;;  %s3351_s21 = smov 512   ;;  %v2726_v4 = vpack.c.bf16 %v2234_v39, %v2232_v33  ;;  %v2238_v0 = vadd.f32 %v2237_v63, %v2061_v3  ;;  %v2066_v9 = vpop.permute.xlu0 %2065  ;;  %v2241_v16 = vpop.f32.mrb[52].mxu1 }
 0x3cf   : > { %s3352_s1 = smov 16   ;;  %s4224_s25 = sshll.u32 %s3564_s16, 6  ;;  %v2242_v22 = vadd.f32 %v2241_v16, %v2066_v9  ;;  %v2243_v5 = vpop.f32.mrb[53].mxu1  ;;  %v2071_v23 = vpop.permute.xlu1 %2070 }
 0x3d0   : > { %2857 = dma.vmem_to_hbm [thread:$0]  (%p3481_p8), %s4078_s24, 2048, %s4084_s17, %s2375_s14, %s3350_s30, %s3351_s21, %s3352_s1   ;;  %v2727_v1 = vpack.c.bf16 %v2238_v0, %v2236_v15  ;;  %v2244_v28 = vadd.f32 %v2243_v5, %v2066_v9  ;;  %v2245_v29 = vpop.f32.mrb[54].mxu1 }
 0x3d1   : > { %s4116_s20 = scalar_lea.vmem [#allocation6], %s4224_s25  ;;  %v2246_v26 = vadd.f32 %v2245_v29, %v2071_v23  ;;  %v2247_v35 = vpop.f32.mrb[55].mxu1  ;;  %s2722_s1 = sshll.u32 %s4068_s13, 6 }
 0x3d2   : > { %2366 = vst [vmem:[%s4116_s20] sm:$0xff] %v2726_v4  ;;  %2367 = vst [vmem:[%s4116_s20 + $0x8] sm:$0xff] %v2727_v1  ;;  %v2728_v37 = vpack.c.bf16 %v2244_v28, %v2242_v22  ;;  %v2248_v34 = vadd.f32 %v2247_v35, %v2071_v23  ;;  %v2076_v38 = vpop.permute.xlu0 %2075  ;;  %v2251_v42 = vpop.f32.mrb[56].mxu1  ;;  %s2413_s24 = sshll.u32 %s4116_s20, 4  ;;  %s4225_s15 = sld [smem:[#allocation17_spill]]  ;;  %s4126_s24 = int_to_ptr.vmem [resolvable:$true] %s2413_s24 }
 0x3d3   : > { %v2252_v43 = vadd.f32 %v2251_v42, %v2076_v38  ;;  %v2253_v44 = vpop.f32.mrb[57].mxu1  ;;  %v2081_v45 = vpop.permute.xlu1 %2080  ;;  %s2380_s29 = scalar_lea.sflag [#allocation7], %s3564_s16  ;;  %s3246_s19 = scalar_lea.vmem %s4126_s24, 1024 }
 0x3d4   : > { %2368 = vst [vmem:[%s4116_s20 + $0x10] sm:$0xff] %v2728_v37  ;;  %v2729_v30 = vpack.c.bf16 %v2248_v34, %v2246_v26  ;;  %v2254_v47 = vadd.f32 %v2253_v44, %v2076_v38  ;;  %v2255_v48 = vpop.f32.mrb[58].mxu1  ;;  %p3247_p7 = scmp.ne.s32.totalorder %s4126_s24, %s3246_s19  ;;  %s3353_s13 = smov [#allocation6]  }
 0x3d5   : > { %v2256_v50 = vadd.f32 %v2255_v48, %v2081_v45  ;;  %v2257_v51 = vpop.f32.mrb[59].mxu1  ;;  %s3250_s21 = sshll.u32 %s3353_s13, 4  ;;  %s3251_s21 = int_to_ptr.vmem [resolvable:$false] %s3250_s21 }
 0x3d6   : > { %2369 = vst [vmem:[%s4116_s20 + $0x18] sm:$0xff] %v2729_v30  ;;  %v2730_v52 = vpack.c.bf16 %v2254_v47, %v2252_v43  ;;  %v2258_v53 = vadd.f32 %v2257_v51, %v2081_v45  ;;  %v2086_v55 = vpop.permute.xlu0 %2085  ;;  %v2261_v56 = vpop.f32.mrb[60].mxu1  ;;  %p3248_p10 = pnand %p3247_p7, %p3481_p8  ;;  %s3252_s25 = scalar_lea.vmem %s3251_s21, 2048 }
 0x3d7   : > { %v2262_v57 = vadd.f32 %v2261_v56, %v2086_v55  ;;  %v2263_v58 = vpop.f32.mrb[61].mxu1  ;;  %v2091_v59 = vpop.permute.xlu1 %2090  ;;  %p3253_p12 = scmp.lt.s32.totalorder %s4126_s24, %s3251_s21  ;;  %p3254_p13 = scmp.lt.s32.totalorder %s3252_s25, %s3246_s19 }
 0x3d8   : > { %2370 = vst [vmem:[%s4116_s20 + $0x20] sm:$0xff] %v2730_v52  ;;  %v2731_v54 = vpack.c.bf16 %v2258_v53, %v2256_v50  ;;  %v2264_v6 = vadd.f32 %v2263_v58, %v2086_v55  ;;  %v2265_v60 = vpop.f32.mrb[62].mxu1  ;;  %s4131_s0 = scalar_lea.hbm %s4225_s15, %s2722_s1  ;;  %p3249_p11 = pneg %p3248_p10 }
 0x3d9   : > { %v2266_v41 = vadd.f32 %v2265_v60, %v2091_v59  ;;  %v2267_v7 = vpop.f32.mrb[63].mxu1  ;;  %p3255_p0 = por %p3254_p13, %p3253_p12 }
 0x3da   : > { %2371 = vst [vmem:[%s4116_s20 + $0x28] sm:$0xff] %v2731_v54  ;;  %v2732_v8 = vpack.c.bf16 %v2264_v6, %v2262_v57  ;;  %v2268_v10 = vadd.f32 %v2267_v7, %v2091_v59 }
 0x3db   : > { %p3256_p1 = pnand %p3255_p0, %p3249_p11 }
 0x3dc   : > { %2372 = vst [vmem:[%s4116_s20 + $0x30] sm:$0xff] %v2732_v8  ;;  %v2733_v46 = vpack.c.bf16 %v2268_v10, %v2266_v41 }
 0x3de   : > { %2373 = vst [vmem:[%s4116_s20 + $0x38] sm:$0xff] %v2733_v46 }
 0x3df   : > { %3259 = shalt.err (!%p3256_p1)
}
 0x3e0   : > { %s3260_s20 = scalar_lea.hbm %s4131_s0, 1024  ;;  %s3264_s14 = scalar_lea.hbm %s4225_s15, 4096 }
 0x3e1   : > { %p3261_p2 = scmp.ne.s32.totalorder %s4131_s0, %s3260_s20  ;;  %p3265_p5 = scmp.lt.u32.totalorder %s4131_s0, %s4225_s15 }
 0x3e2   : > { %p3266_p6 = scmp.lt.u32.totalorder %s3264_s14, %s3260_s20  ;;  %p3268_p10 = scmp.lt.u32.totalorder %s3260_s20, %s4131_s0 }
 0x3e3   : > { %p3262_p3 = pnand %p3261_p2, %p3481_p8 }
 0x3e4   : > { %p3267_p7 = por %p3266_p6, %p3265_p5 }
 0x3e5   : > { %p3263_p4 = pneg %p3262_p3 }
 0x3e6   : > { %p3269_p11 = por %p3268_p10, %p3267_p7 }
 0x3e8   : > { %p3270_p12 = pnand %p3269_p11, %p3263_p4 }
 0x3ea   : > { %3273 = shalt.err (!%p3270_p12)
}
 0x3eb   : > { %s3354_s19 = smov 128   ;;  %s3355_s25 = smov 8  }
 0x3ec   : > { %2858 = dma.vmem_to_hbm [thread:$0]  (%p3481_p8), %s4126_s24, 1024, %s4131_s0, %s2380_s29, %s3354_s19, %s3350_s30, %s3355_s25  }
 0x3ed PF: > { %s4226_s1 = sld [smem:[#allocation10_spill]]  ;;  %p2868_p13 = scmp.ge.s32.totalorder %s3344_s28, 2 }
 0x3ef   : > { %p2862_p0 = pnand %p2868_p13, %p3485_p9 }
 0x3f3   : > { %s2428_s14 = sand.u32 1, %s4226_s1  }
 0x3f4   : > { %s2429_s20 = scalar_lea.sflag [#allocation5], %s2428_s14 }
 0x3f5   : > { %3307 = dma.done.wait (!%p2862_p0), %s2429_s20, 2048  }
 0x3f6   : > { %3309 = vsyncadd (!%p2862_p0), %s2429_s20, 4294965248  ;;  %s2438_s13 = scalar_lea.sflag [#allocation7], %s2428_s14 }
 0x3f7   : > { %3311 = dma.done.wait (!%p2862_p0), %s2438_s13, 1024  }
 0x3f8   : > { %3313 = vsyncadd (!%p2862_p0), %s2438_s13, 4294966272  ;;  %s29_s28 = sadd.s32 1, %s3344_s28   ;;  %s4228_s16 = sld [smem:[#allocation11_spill]] }
 0x3f9   : > { %p26_p1 = scmp.ge.s32.totalorder %s29_s28, 6   ;;  %s4229_s18 = sld [smem:[#allocation12_spill]] }
 0x3fa   : > { %s4230_s21 = smov %s3320_s22  ;;  %s4231_s22 = smov %s3324_s23 }
 0x3fb   : > { %s4232_s23 = smov %s3493_s12  ;;  %s4233_s24 = smov %s3336_s26 }
 0x3fc   : > { %s4234_s25 = smov %s3340_s27  ;;  %28 = sbr.rel (!%p26_p1) target bundleno = 11 (0xb), region = 196 }
 0x3fe   : > { %s4235_s26 = smov %s4228_s16 }
 0x3ff   : > { %s4236_s27 = smov %s4229_s18 }
 0x403   :  { %2443 = vsyncpa [#allocation5], 1 }
 0x404   :  { %2445 = vsyncpa [#allocation5 + $0x1], 1 }
 0x405   :  { %2446 = vsyncpa [#allocation7], 1 }
 0x406   :  { %2448 = vsyncpa [#allocation7 + $0x1], 1 }

</bundles_post_ra>
